<compile_context>
chip_gen: v7x
topology: tpu7x:2x2x1
jax: 0.10.0
libtpu: 0.0.40
codegen_flags: <defaults>
</compile_context>

<pallas_src>
import math

import jax
import jax.numpy as jnp
from jax.experimental import pallas as pl
from jax.experimental.pallas import tpu as pltpu

IMAGE_DIM = 28 * 28      # 784
NUM_CLASSES = 10
EMB_DIM = 10
EMB_PAD = 128            # lane-aligned one-hot / fused-embedding width
H1 = 512
H2 = 256
OUT = 1
OUT_PAD = 128            # lane-dense fc3 width; only column 0 is real


def _leaky_relu(x, slope=0.2):
    return jnp.where(x > 0, x, slope * x)


def _disc_kernel(lab_ref, img_ref, w1a_ref, ew1_ref, b1_ref,
                 w2_ref, b2_ref, w3_ref, b3_ref, o_ref):
    tile_b = img_ref.shape[0]

    # In-kernel embedding lookup fused into fc1: one_hot(label) @ (Emb @ W1_label).
    lab = lab_ref[...]                                                # (tb, 1) i32
    onehot = (lab == jax.lax.broadcasted_iota(jnp.int32, (tile_b, EMB_PAD), 1)
              ).astype(jnp.bfloat16)                                  # (tb, 128)

    # fc1 = image @ W1_img + one_hot @ (Emb @ W1_label), then LeakyReLU(0.2).
    img = img_ref[...].astype(jnp.bfloat16)
    h = jnp.dot(img, w1a_ref[...], preferred_element_type=jnp.float32)
    h += jnp.dot(onehot, ew1_ref[...], preferred_element_type=jnp.float32)
    h = _leaky_relu(h + b1_ref[...])

    # fc2 + LeakyReLU(0.2)
    h = jnp.dot(h.astype(jnp.bfloat16), w2_ref[...],
                preferred_element_type=jnp.float32)
    h = _leaky_relu(h + b2_ref[...])

    # fc3 (lane-dense, zero-padded to 128 outputs) + sigmoid
    h = jnp.dot(h.astype(jnp.bfloat16), w3_ref[...],
                preferred_element_type=jnp.float32)
    o_ref[...] = jax.nn.sigmoid(h + b3_ref[...]).astype(o_ref.dtype)


def _round_up(x, m):
    return (x + m - 1) // m * m


@jax.jit
def discriminator_forward(image, labels, params):
    """image: (B, 784) float32, labels: (B,) int32 in [0, 10)."""
    B = image.shape[0]
    b8 = _round_up(B, 8)
    tile_b = 256 if b8 >= 256 else b8          # match 256-row MXU on v6e/v7x
    b_pad = _round_up(B, tile_b)

    image = image.astype(jnp.float32)
    labels = labels.astype(jnp.int32).reshape(-1, 1)                  # (B, 1)
    if b_pad != B:
        image = jnp.pad(image, ((0, b_pad - B), (0, 0)))
        labels = jnp.pad(labels, ((0, b_pad - B), (0, 0)))

    grid = (b_pad // tile_b,)

    flops = 2 * b_pad * (IMAGE_DIM * H1 + EMB_PAD * H1 + H1 * H2 + H2 * OUT_PAD)
    bytes_accessed = (
        b_pad * IMAGE_DIM * 4 + b_pad * 1 * 4                         # image + labels
        + (IMAGE_DIM * H1 + EMB_PAD * H1 + H1 * H2 + H2 * OUT_PAD) * 2  # bf16 weights
        + (H1 + H2 + OUT_PAD) * 4                                     # biases
        + b_pad * OUT_PAD * 4)                                        # output
    cost = pl.CostEstimate(flops=flops,
                           transcendentals=b_pad * OUT_PAD,
                           bytes_accessed=bytes_accessed)

    out = pl.pallas_call(
        _disc_kernel,
        out_shape=jax.ShapeDtypeStruct((b_pad, OUT_PAD), jnp.float32),
        grid=grid,
        in_specs=[
            pl.BlockSpec((tile_b, 1), lambda i: (i, 0)),              # labels tile
            pl.BlockSpec((tile_b, IMAGE_DIM), lambda i: (i, 0)),      # image tile
            pl.BlockSpec((IMAGE_DIM, H1), lambda i: (0, 0)),          # w1a (resident)
            pl.BlockSpec((EMB_PAD, H1), lambda i: (0, 0)),            # emb@w1b (resident)
            pl.BlockSpec((1, H1), lambda i: (0, 0)),                  # b1
            pl.BlockSpec((H1, H2), lambda i: (0, 0)),                 # w2 (resident)
            pl.BlockSpec((1, H2), lambda i: (0, 0)),                  # b2
            pl.BlockSpec((H2, OUT_PAD), lambda i: (0, 0)),            # w3 padded
            pl.BlockSpec((1, OUT_PAD), lambda i: (0, 0)),             # b3 padded
        ],
        out_specs=pl.BlockSpec((tile_b, OUT_PAD), lambda i: (i, 0)),
        compiler_params=pltpu.CompilerParams(
            dimension_semantics=("parallel",)),
        cost_estimate=cost,
    )(labels, image, params["w1a"], params["emb_w1"], params["b1"],
      params["w2"], params["b2"], params["w3"], params["b3"])

    return out[:B, :OUT]


def init_params(key):
    """Raw f32 params matching the torch module (weights stored (in, out))."""
    ks = jax.random.split(key, 7)

    def linear(kw, kb, fan_in, fan_out):
        bound = 1.0 / math.sqrt(fan_in)
        w = jax.random.uniform(kw, (fan_in, fan_out), jnp.float32, -bound, bound)
        b = jax.random.uniform(kb, (fan_out,), jnp.float32, -bound, bound)
        return w, b

    emb = jax.random.normal(ks[0], (NUM_CLASSES, EMB_DIM), jnp.float32)
    w1, b1 = linear(ks[1], ks[2], IMAGE_DIM + EMB_DIM, H1)
    w2, b2 = linear(ks[3], ks[4], H1, H2)
    w3, b3 = linear(ks[5], ks[6], H2, OUT)
    return {"emb": emb, "w1": w1, "b1": b1, "w2": w2, "b2": b2,
            "w3": w3, "b3": b3}


def prepare_params(raw):
    """One-time packing: split/fuse/pad/cast weights so the per-step forward
    pass does zero repacking and zero wrapper-side gathers."""
    w1 = raw["w1"]
    w1a = w1[:IMAGE_DIM].astype(jnp.bfloat16)                         # (784, 512)
    # Fuse embedding into the label-half of fc1: (10,10) @ (10,512) -> (10,512),
    # zero-padded to (128, 512) so the in-kernel one-hot matmul is lane-aligned.
    emb_w1 = raw["emb"] @ w1[IMAGE_DIM:]                              # f32 (10, 512)
    emb_w1 = (jnp.zeros((EMB_PAD, H1), jnp.float32)
              .at[:NUM_CLASSES].set(emb_w1)).astype(jnp.bfloat16)     # (128, 512)
    w3p = (jnp.zeros((H2, OUT_PAD), jnp.float32)
           .at[:, :OUT].set(raw["w3"])).astype(jnp.bfloat16)          # (256, 128)
    b3p = (jnp.zeros((1, OUT_PAD), jnp.float32)
           .at[:, :OUT].set(raw["b3"].reshape(1, OUT)))               # (1, 128)
    return {
        "w1a": w1a, "emb_w1": emb_w1, "b1": raw["b1"].reshape(1, H1),
        "w2": raw["w2"].astype(jnp.bfloat16), "b2": raw["b2"].reshape(1, H2),
        "w3": w3p, "b3": b3p,
    }


def _reference_forward(image, labels, raw):
    emb = jnp.take(raw["emb"], labels, axis=0)
    x = jnp.concatenate([image, emb], axis=1)
    h = _leaky_relu(x @ raw["w1"] + raw["b1"])
    h = _leaky_relu(h @ raw["w2"] + raw["b2"])
    return jax.nn.sigmoid(h @ raw["w3"] + raw["b3"])


if __name__ == "__main__":
    key = jax.random.PRNGKey(0)
    k_img, k_lab, k_par = jax.random.split(key, 3)

    B = 8
    image = jax.random.normal(k_img, (B, IMAGE_DIM), jnp.float32)   # flattened 28x28
    labels = jax.random.randint(k_lab, (B,), 0, NUM_CLASSES, jnp.int32)

    raw = init_params(k_par)
    params = prepare_params(raw)   # one-time packing, outside the hot path

    out = jax.block_until_ready(discriminator_forward(image, labels, params))
    ref = _reference_forward(image, labels, raw)

    assert out.shape == (B, OUT), out.shape
    err = float(jnp.max(jnp.abs(out - ref)))
    assert err < 2e-2, f"mismatch vs f32 reference, max abs err {err}"

    print("KERNEL_OK")
</pallas_src>

<mosaic_0001>
module attributes {stable_mosaic.version = 11 : i64} {
  func.func @_disc_kernel(%arg0: i32, %arg1: memref<8x1xi32, #tpu.memory_space<vmem>>, %arg2: memref<8x784xf32, #tpu.memory_space<vmem>>, %arg3: memref<784x512xbf16, #tpu.memory_space<vmem>>, %arg4: memref<128x512xbf16, #tpu.memory_space<vmem>>, %arg5: memref<1x512xf32, #tpu.memory_space<vmem>>, %arg6: memref<512x256xbf16, #tpu.memory_space<vmem>>, %arg7: memref<1x256xf32, #tpu.memory_space<vmem>>, %arg8: memref<256x128xbf16, #tpu.memory_space<vmem>>, %arg9: memref<1x128xf32, #tpu.memory_space<vmem>>, %arg10: memref<8x128xf32, #tpu.memory_space<vmem>>) attributes {dimension_semantics = [#tpu.dimension_semantics<parallel>], iteration_bounds = array<i64: 1>, scalar_prefetch = 0 : i64, scratch_operands = 0 : i64, tpu.core_type = #tpu.core_type<tc>, window_params = [{transform_indices = @transform_0, window_bounds = array<i64: 8, 1>}, {transform_indices = @transform_1, window_bounds = array<i64: 8, 784>}, {pipeline_mode = #tpu.pipeline_mode<synchronous>, transform_indices = @transform_2, window_bounds = array<i64: 784, 512>}, {pipeline_mode = #tpu.pipeline_mode<synchronous>, transform_indices = @transform_3, window_bounds = array<i64: 128, 512>}, {pipeline_mode = #tpu.pipeline_mode<synchronous>, transform_indices = @transform_4, window_bounds = array<i64: 1, 512>}, {pipeline_mode = #tpu.pipeline_mode<synchronous>, transform_indices = @transform_5, window_bounds = array<i64: 512, 256>}, {pipeline_mode = #tpu.pipeline_mode<synchronous>, transform_indices = @transform_6, window_bounds = array<i64: 1, 256>}, {pipeline_mode = #tpu.pipeline_mode<synchronous>, transform_indices = @transform_7, window_bounds = array<i64: 256, 128>}, {pipeline_mode = #tpu.pipeline_mode<synchronous>, transform_indices = @transform_8, window_bounds = array<i64: 1, 128>}, {transform_indices = @transform_9, window_bounds = array<i64: 8, 128>}]} {
    %c0 = arith.constant 0 : index
    %c0_0 = arith.constant 0 : index
    %0 = vector.load %arg1[%c0, %c0_0] : memref<8x1xi32, #tpu.memory_space<vmem>>, vector<8x1xi32>
    %1 = tpu.iota {dimensions = array<i32: 1>} : vector<8x128xi32>
    %2 = vector.broadcast %0 : vector<8x1xi32> to vector<8x128xi32>
    %3 = arith.cmpi eq, %2, %1 : vector<8x128xi32>
    %4 = arith.extui %3 : vector<8x128xi1> to vector<8x128xi32>
    %5 = arith.sitofp %4 : vector<8x128xi32> to vector<8x128xf32>
    %6 = arith.truncf %5 : vector<8x128xf32> to vector<8x128xbf16>
    %c0_1 = arith.constant 0 : index
    %c0_2 = arith.constant 0 : index
    %7 = vector.load %arg2[%c0_1, %c0_2] : memref<8x784xf32, #tpu.memory_space<vmem>>, vector<8x784xf32>
    %8 = arith.truncf %7 : vector<8x784xf32> to vector<8x784xbf16>
    %c0_3 = arith.constant 0 : index
    %c0_4 = arith.constant 0 : index
    %9 = vector.load %arg3[%c0_3, %c0_4] : memref<784x512xbf16, #tpu.memory_space<vmem>>, vector<784x512xbf16>
    %cst = arith.constant dense<0.000000e+00> : vector<8x512xf32>
    %10 = tpu.matmul %8, %9, %cst {dimension_numbers = #tpu.dot_dimension_numbers<[1], [0], [0], [1], [0, 0, 1, 1], [], []>} : vector<8x784xbf16>, vector<784x512xbf16>, vector<8x512xf32> -> vector<8x512xf32>
    %c0_5 = arith.constant 0 : index
    %c0_6 = arith.constant 0 : index
    %11 = vector.load %arg4[%c0_5, %c0_6] : memref<128x512xbf16, #tpu.memory_space<vmem>>, vector<128x512xbf16>
    %cst_7 = arith.constant dense<0.000000e+00> : vector<8x512xf32>
    %12 = tpu.matmul %6, %11, %cst_7 {dimension_numbers = #tpu.dot_dimension_numbers<[1], [0], [0], [1], [0, 0, 1, 1], [], []>} : vector<8x128xbf16>, vector<128x512xbf16>, vector<8x512xf32> -> vector<8x512xf32>
    %13 = arith.addf %10, %12 : vector<8x512xf32>
    %c0_8 = arith.constant 0 : index
    %c0_9 = arith.constant 0 : index
    %14 = vector.load %arg5[%c0_8, %c0_9] : memref<1x512xf32, #tpu.memory_space<vmem>>, vector<1x512xf32>
    %15 = vector.broadcast %14 : vector<1x512xf32> to vector<8x512xf32>
    %16 = arith.addf %13, %15 : vector<8x512xf32>
    %cst_10 = arith.constant 0.000000e+00 : f32
    %17 = vector.broadcast %cst_10 : f32 to vector<8x512xf32>
    %18 = arith.cmpf ogt, %16, %17 : vector<8x512xf32>
    %cst_11 = arith.constant 2.000000e-01 : f32
    %19 = vector.broadcast %cst_11 : f32 to vector<8x512xf32>
    %20 = arith.mulf %19, %16 : vector<8x512xf32>
    %21 = arith.select %18, %16, %20 : vector<8x512xi1>, vector<8x512xf32>
    %22 = arith.truncf %21 : vector<8x512xf32> to vector<8x512xbf16>
    %c0_12 = arith.constant 0 : index
    %c0_13 = arith.constant 0 : index
    %23 = vector.load %arg6[%c0_12, %c0_13] : memref<512x256xbf16, #tpu.memory_space<vmem>>, vector<512x256xbf16>
    %cst_14 = arith.constant dense<0.000000e+00> : vector<8x256xf32>
    %24 = tpu.matmul %22, %23, %cst_14 {dimension_numbers = #tpu.dot_dimension_numbers<[1], [0], [0], [1], [0, 0, 1, 1], [], []>} : vector<8x512xbf16>, vector<512x256xbf16>, vector<8x256xf32> -> vector<8x256xf32>
    %c0_15 = arith.constant 0 : index
    %c0_16 = arith.constant 0 : index
    %25 = vector.load %arg7[%c0_15, %c0_16] : memref<1x256xf32, #tpu.memory_space<vmem>>, vector<1x256xf32>
    %26 = vector.broadcast %25 : vector<1x256xf32> to vector<8x256xf32>
    %27 = arith.addf %24, %26 : vector<8x256xf32>
    %cst_17 = arith.constant 0.000000e+00 : f32
    %28 = vector.broadcast %cst_17 : f32 to vector<8x256xf32>
    %29 = arith.cmpf ogt, %27, %28 : vector<8x256xf32>
    %cst_18 = arith.constant 2.000000e-01 : f32
    %30 = vector.broadcast %cst_18 : f32 to vector<8x256xf32>
    %31 = arith.mulf %30, %27 : vector<8x256xf32>
    %32 = arith.select %29, %27, %31 : vector<8x256xi1>, vector<8x256xf32>
    %33 = arith.truncf %32 : vector<8x256xf32> to vector<8x256xbf16>
    %c0_19 = arith.constant 0 : index
    %c0_20 = arith.constant 0 : index
    %34 = vector.load %arg8[%c0_19, %c0_20] : memref<256x128xbf16, #tpu.memory_space<vmem>>, vector<256x128xbf16>
    %cst_21 = arith.constant dense<0.000000e+00> : vector<8x128xf32>
    %35 = tpu.matmul %33, %34, %cst_21 {dimension_numbers = #tpu.dot_dimension_numbers<[1], [0], [0], [1], [0, 0, 1, 1], [], []>} : vector<8x256xbf16>, vector<256x128xbf16>, vector<8x128xf32> -> vector<8x128xf32>
    %c0_22 = arith.constant 0 : index
    %c0_23 = arith.constant 0 : index
    %36 = vector.load %arg9[%c0_22, %c0_23] : memref<1x128xf32, #tpu.memory_space<vmem>>, vector<1x128xf32>
    %37 = vector.broadcast %36 : vector<1x128xf32> to vector<8x128xf32>
    %38 = arith.addf %35, %37 : vector<8x128xf32>
    %39 = arith.negf %38 : vector<8x128xf32>
    %40 = math.exp %39 : vector<8x128xf32>
    %cst_24 = arith.constant 1.000000e+00 : f32
    %41 = vector.broadcast %cst_24 : f32 to vector<8x128xf32>
    %42 = arith.addf %41, %40 : vector<8x128xf32>
    %43 = arith.divf %41, %42 : vector<8x128xf32>
    %c0_25 = arith.constant 0 : index
    %c0_26 = arith.constant 0 : index
    %44 = vector.load %arg10[%c0_25, %c0_26] : memref<8x128xf32, #tpu.memory_space<vmem>>, vector<8x128xf32>
    tpu.vector_store %arg10[%c0_25, %c0_26], %43 {strides = array<i32>} : memref<8x128xf32, #tpu.memory_space<vmem>>, vector<8x128xf32>,
    return
  }
  func.func @transform_0(%arg0: i32) -> (i32, i32) {
    %c0_i32 = arith.constant 0 : i32
    %c0_i32_0 = arith.constant 0 : i32
    return %arg0, %c0_i32 : i32, i32
  }
  func.func @transform_1(%arg0: i32) -> (i32, i32) {
    %c0_i32 = arith.constant 0 : i32
    %c0_i32_0 = arith.constant 0 : i32
    return %arg0, %c0_i32 : i32, i32
  }
  func.func @transform_2(%arg0: i32) -> (i32, i32) {
    %c0_i32 = arith.constant 0 : i32
    %c0_i32_0 = arith.constant 0 : i32
    %c0_i32_1 = arith.constant 0 : i32
    return %c0_i32, %c0_i32_0 : i32, i32
  }
  func.func @transform_3(%arg0: i32) -> (i32, i32) {
    %c0_i32 = arith.constant 0 : i32
    %c0_i32_0 = arith.constant 0 : i32
    %c0_i32_1 = arith.constant 0 : i32
    return %c0_i32, %c0_i32_0 : i32, i32
  }
  func.func @transform_4(%arg0: i32) -> (i32, i32) {
    %c0_i32 = arith.constant 0 : i32
    %c0_i32_0 = arith.constant 0 : i32
    %c0_i32_1 = arith.constant 0 : i32
    return %c0_i32, %c0_i32_0 : i32, i32
  }
  func.func @transform_5(%arg0: i32) -> (i32, i32) {
    %c0_i32 = arith.constant 0 : i32
    %c0_i32_0 = arith.constant 0 : i32
    %c0_i32_1 = arith.constant 0 : i32
    return %c0_i32, %c0_i32_0 : i32, i32
  }
  func.func @transform_6(%arg0: i32) -> (i32, i32) {
    %c0_i32 = arith.constant 0 : i32
    %c0_i32_0 = arith.constant 0 : i32
    %c0_i32_1 = arith.constant 0 : i32
    return %c0_i32, %c0_i32_0 : i32, i32
  }
  func.func @transform_7(%arg0: i32) -> (i32, i32) {
    %c0_i32 = arith.constant 0 : i32
    %c0_i32_0 = arith.constant 0 : i32
    %c0_i32_1 = arith.constant 0 : i32
    return %c0_i32, %c0_i32_0 : i32, i32
  }
  func.func @transform_8(%arg0: i32) -> (i32, i32) {
    %c0_i32 = arith.constant 0 : i32
    %c0_i32_0 = arith.constant 0 : i32
    %c0_i32_1 = arith.constant 0 : i32
    return %c0_i32, %c0_i32_0 : i32, i32
  }
  func.func @transform_9(%arg0: i32) -> (i32, i32) {
    %c0_i32 = arith.constant 0 : i32
    %c0_i32_0 = arith.constant 0 : i32
    return %arg0, %c0_i32 : i32, i32
  }
}

</mosaic_0001>

<bundles_post_ra>
// kernel: discriminator_forward.1
= control target key start
LH: loop header
LB: loop body
LE: loop exit
PB: predicated region body
PF: predicated region fallthrough
CT: control target
= control target key end

     0   :  { %14 = vsyncpa [#allocation3], 0  ;;  %s3787_s0 = inlined_call_operand.vmem [shape: s32[8,1], index: 0, kind: input, shape index: {}]   ;;  %s3788_s1 = inlined_call_operand.hbm [shape: f32[8,784], index: 1, kind: input, shape index: {}]   ;;  %s3789_s2 = inlined_call_operand.hbm [shape: bf16[784,512], index: 2, kind: input, shape index: {}]   ;;  %s3790_s3 = inlined_call_operand.hbm [shape: bf16[128,512], index: 3, kind: input, shape index: {}]   ;;  %s3791_s4 = inlined_call_operand.vmem [shape: f32[1,512], index: 4, kind: input, shape index: {}]   ;;  %s3792_s5 = inlined_call_operand.hbm [shape: bf16[512,256], index: 5, kind: input, shape index: {}]   ;;  %s3793_s6 = inlined_call_operand.vmem [shape: f32[1,256], index: 6, kind: input, shape index: {}]   ;;  %s3794_s7 = inlined_call_operand.hbm [shape: bf16[256,128], index: 7, kind: input, shape index: {}]   ;;  %s3795_s8 = inlined_call_operand.vmem [shape: f32[1,128], index: 8, kind: input, shape index: {}]   ;;  %s3796_s9 = inlined_call_operand.vmem [shape: f32[8,128], index: 9, kind: output, shape index: {}]  }
   0x1   :  { %15 = vsyncpa [#allocation5], 0 }
   0x2   :  { %16 = vsyncpa [#allocation8], 0  ;;  %s3555_s30 = smov [#allocation4]   ;;  %s3439_s13 = scalar_lea.hbm %s3789_s2, 25088 }
   0x3   :  { %s34_s10 = sshll.u32 %s3555_s30, 4  ;;  %p3440_p0 = scmp.ne.s32.totalorder %s3789_s2, %s3439_s13  ;;  %s35_s10 = int_to_ptr.vmem [resolvable:$true] %s34_s10 }
   0x4   :  { %p3443_p1 = scmp.lt.u32.totalorder %s3439_s13, %s3789_s2 }
   0x6   :  { %p3445_p2 = pnand %p3443_p1, %p3440_p0 }
   0x8   :  { %3448 = shalt.err (!%p3445_p2)
}
   0x9   :  { %s3449_s18 = scalar_lea.vmem %s35_s10, 25088  ;;  %p3454_p4 = scmp.lt.s32.totalorder %s35_s10, %s35_s10 }
   0xa   :  { %p3450_p3 = scmp.ne.s32.totalorder %s35_s10, %s3449_s18  ;;  %p3455_p5 = scmp.lt.s32.totalorder %s3449_s18, %s3449_s18 }
   0xc   :  { %p3456_p6 = por %p3455_p5, %p3454_p4 }
   0xe   :  { %p3457_p7 = pnand %p3456_p6, %p3450_p3 }
  0x10   :  { %3460 = shalt.err (!%p3457_p7)
}
  0x11   :  { %s3556_s19 = smov 256   ;;  %s3557_s20 = smov 16  }
  0x12   :  { %40 = dma.hbm_to_vmem [thread:$0]  %s3789_s2, 25088, %s35_s10, [#allocation5], %s3556_s19, %s3556_s19, %s3557_s20  }
  0x13   :  { %s3558_s23 = smov [#allocation7]   ;;  %s3461_s27 = scalar_lea.hbm %s3792_s5, 8192 }
  0x14   :  { %s60_s24 = sshll.u32 %s3558_s23, 4  ;;  %p3462_p8 = scmp.ne.s32.totalorder %s3792_s5, %s3461_s27  ;;  %s61_s24 = int_to_ptr.vmem [resolvable:$true] %s60_s24 }
  0x15   :  { %p3465_p9 = scmp.lt.u32.totalorder %s3461_s27, %s3792_s5 }
  0x17   :  { %p3467_p10 = pnand %p3465_p9, %p3462_p8 }
  0x19   :  { %3470 = shalt.err (!%p3467_p10)
}
  0x1a   :  { %s3471_s12 = scalar_lea.vmem %s61_s24, 8192  ;;  %p3476_p12 = scmp.lt.s32.totalorder %s61_s24, %s61_s24 }
  0x1b   :  { %p3472_p11 = scmp.ne.s32.totalorder %s61_s24, %s3471_s12  ;;  %p3477_p13 = scmp.lt.s32.totalorder %s3471_s12, %s3471_s12 }
  0x1d   :  { %p3478_p0 = por %p3477_p13, %p3476_p12 }
  0x1f   :  { %p3479_p1 = pnand %p3478_p0, %p3472_p11 }
  0x21   :  { %3482 = shalt.err (!%p3479_p1)
}
  0x22   :  { %s3559_s2 = smov 128   ;;  %s3560_s10 = smov 8  }
  0x23   :  { %66 = dma.hbm_to_vmem [thread:$0]  %s3792_s5, 8192, %s61_s24, [#allocation8], %s3559_s2, %s3559_s2, %s3560_s10  }
  0x24   :  { %s3561_s15 = smov [#allocation2]   ;;  %s3562_s17 = smov [#allocation6]  }
  0x25   :  { %s25_s16 = sshll.u32 %s3561_s15, 4  ;;  %s46_s18 = sshll.u32 %s3562_s17, 4  ;;  %s26_s16 = int_to_ptr.vmem [resolvable:$true] %s25_s16  ;;  %s3645_s18 = int_to_ptr.vmem [resolvable:$true] %s46_s18 }
  0x26   :  { %s3483_s23 = scalar_lea.hbm %s3788_s1, 896 }
  0x27   :  { %p3484_p2 = scmp.ne.s32.totalorder %s3788_s1, %s3483_s23  ;;  %p3487_p3 = scmp.lt.u32.totalorder %s3483_s23, %s3788_s1 }
  0x29   :  { %p3489_p4 = pnand %p3487_p3, %p3484_p2 }
  0x2b   :  { %3492 = shalt.err (!%p3489_p4)
}
  0x2c   :  { %s3493_s5 = scalar_lea.vmem %s26_s16, 896  ;;  %p3498_p6 = scmp.lt.s32.totalorder %s26_s16, %s26_s16 }
  0x2d   :  { %p3494_p5 = scmp.ne.s32.totalorder %s26_s16, %s3493_s5  ;;  %p3499_p7 = scmp.lt.s32.totalorder %s3493_s5, %s3493_s5 }
  0x2f   :  { %p3500_p8 = por %p3499_p7, %p3498_p6 }
  0x31   :  { %p3501_p9 = pnand %p3500_p8, %p3494_p5 }
  0x33   :  { %3504 = shalt.err (!%p3501_p9)
}
  0x34   :  { %28 = dma.hbm_to_vmem [thread:$0]  %s3788_s1, 896, %s26_s16, [#allocation3]  }
  0x35   :  { %s3505_s12 = scalar_lea.hbm %s3790_s3, 4096 }
  0x36   :  { %p3506_p10 = scmp.ne.s32.totalorder %s3790_s3, %s3505_s12  ;;  %p3509_p11 = scmp.lt.u32.totalorder %s3505_s12, %s3790_s3 }
  0x38   :  { %p3511_p12 = pnand %p3509_p11, %p3506_p10 }
  0x3a   :  { %3514 = shalt.err (!%p3511_p12)
}
  0x3b   :  { %s3515_s15 = scalar_lea.vmem %s3645_s18, 4096  ;;  %p3520_p0 = scmp.lt.s32.totalorder %s3645_s18, %s3645_s18 }
  0x3c   :  { %p3516_p13 = scmp.ne.s32.totalorder %s3645_s18, %s3515_s15  ;;  %p3521_p1 = scmp.lt.s32.totalorder %s3515_s15, %s3515_s15 }
  0x3e   :  { %p3522_p2 = por %p3521_p1, %p3520_p0 }
  0x40   :  { %p3523_p3 = pnand %p3522_p2, %p3516_p13 }
  0x42   :  { %3526 = shalt.err (!%p3523_p3)
}
  0x43   :  { %52 = dma.hbm_to_vmem [thread:$0]  %s3790_s3, 4096, %s3645_s18, [#allocation5], %s3556_s19, %s3556_s19, %s3557_s20  }
  0x44   :  { %s3563_s17 = smov [#allocation9]   ;;  %s3527_s25 = scalar_lea.hbm %s3794_s7, 2048 }
  0x45   :  { %s74_s21 = sshll.u32 %s3563_s17, 4  ;;  %p3528_p4 = scmp.ne.s32.totalorder %s3794_s7, %s3527_s25  ;;  %s75_s21 = int_to_ptr.vmem [resolvable:$true] %s74_s21 }
  0x46   :  { %p3531_p5 = scmp.lt.u32.totalorder %s3527_s25, %s3794_s7 }
  0x48   :  { %p3533_p6 = pnand %p3531_p5, %p3528_p4 }
  0x4a   :  { %3536 = shalt.err (!%p3533_p6)
}
  0x4b   :  { %s3537_s24 = scalar_lea.vmem %s75_s21, 2048  ;;  %p3542_p8 = scmp.lt.s32.totalorder %s75_s21, %s75_s21 }
  0x4c   :  { %p3538_p7 = scmp.ne.s32.totalorder %s75_s21, %s3537_s24  ;;  %p3543_p9 = scmp.lt.s32.totalorder %s3537_s24, %s3537_s24 }
  0x4e   :  { %p3544_p10 = por %p3543_p9, %p3542_p8 }
  0x50   :  { %p3545_p11 = pnand %p3544_p10, %p3538_p7 }
  0x52   :  { %3548 = shalt.err (!%p3545_p11)
}
  0x53   :  { %s3564_s3 = smov 64   ;;  %s3565_s19 = smov 4  }
  0x54   :  { %80 = dma.hbm_to_vmem [thread:$0]  %s3794_s7, 2048, %s75_s21, [#allocation8], %s3564_s3, %s3564_s3, %s3565_s19  }
  0x55   :  { %3549 = dma.done.wait [#allocation3], 896  }
  0x56   :  { %3550 = vsyncadd [#allocation3], 4294966400 }
  0x57   :  { %3551 = dma.done.wait [#allocation5], 29184  }
  0x58   :  { %3552 = vsyncadd [#allocation5], 4294938112 }
  0x59   :  { %3553 = dma.done.wait [#allocation8], 10240  }
  0x5a   :  { %3554 = vsyncadd [#allocation8], 4294957056  ;;  %v3566_v0 = vmov 0   ;;  %v99_v1 = vld [vmem:[%s3787_s0] sm:$0xff]  ;;  %v2981_v2 = vld [vmem:[#allocation4 + $0x4] ss:$16 sps:$4 sm:$0xff]  }
  0x5b   :  { %2980 = vset.pattern.permute.xlu0 %v3566_v0  ;;  %543 = vmatprep.mubr.bf16.mxu1 %v3566_v0  ;;  %v2983_v3 = vld [vmem:[#allocation4] ss:$16 sps:$4 sm:$0xff]   ;;  %v2984_v4 = vld [vmem:[#allocation4 + $0x24] ss:$16 sps:$4 sm:$0xff]   ;;  %v3055_v41 = vld [vmem:[#allocation6 + $0xc] ss:$16 sps:$4 sm:$0xff]  }
  0x5c   :  { %103 = vperm.xlu0 %2980, %v99_v1   ;;  %1577 = vmatprep.subr.bf16.mxu0 %v2981_v2  ;;  %v2986_v5 = vld [vmem:[#allocation4 + $0x20] ss:$16 sps:$4 sm:$0xff]   ;;  %v2987_v6 = vld [vmem:[#allocation4 + $0x44] ss:$16 sps:$4 sm:$0xff]   ;;  %v109_v53 = vld [vmem:[#allocation2] sm:$0xff]  ;;  %vm1573_vm2 = vcmask 130048  }
  0x5d   :  { %1578 = vmatpush1.bf16.msra.mxu0 %v2983_v3  ;;  %v2989_v7 = vld [vmem:[#allocation4 + $0x40] ss:$16 sps:$4 sm:$0xff]   ;;  %v2990_v8 = vld [vmem:[#allocation4 + $0x64] ss:$16 sps:$4 sm:$0xff]   ;;  %v3699_v55 = vpack.c.bf16 %v109_v53, %v109_v53  ;;  %v3065_v53 = vld [vmem:[#allocation6 + $0x88] ss:$16 sps:$4 sm:$0xff]  }
  0x5e   :  { %1579 = vmatprep.subr.bf16.mxu0 %v2984_v4  ;;  %v2992_v9 = vld [vmem:[#allocation4 + $0x60] ss:$16 sps:$4 sm:$0xff]   ;;  %v3005_v10 = vld [vmem:[#allocation6 + $0x4] ss:$16 sps:$4 sm:$0xff]  }
  0x5f   :  { %v3007_v11 = vld [vmem:[#allocation6] ss:$16 sps:$4 sm:$0xff]   ;;  %v2993_v12 = vld [vmem:[#allocation4 + $0x84] ss:$16 sps:$4 sm:$0xff]   ;;  %511 = vmatprep.subr.bf16.mxu1 %v3005_v10 }
  0x60   :  { %512 = vmatpush1.bf16.msra.mxu1 %v3007_v11  ;;  %v3011_v13 = vld [vmem:[#allocation6 + $0x24] ss:$16 sps:$4 sm:$0xff]   ;;  %v3013_v14 = vld [vmem:[#allocation6 + $0x20] ss:$16 sps:$4 sm:$0xff]  }
  0x61   :  { %1580 = vmatpush1.bf16.msra.mxu0 %v2986_v5  ;;  %v2995_v15 = vld [vmem:[#allocation4 + $0x80] ss:$16 sps:$4 sm:$0xff]   ;;  %513 = vmatprep.subr.bf16.mxu1 %v3011_v13  ;;  %v2996_v16 = vld [vmem:[#allocation4 + $0xa4] ss:$16 sps:$4 sm:$0xff]  }
  0x62   :  { %1581 = vmatprep.subr.bf16.mxu0 %v2987_v6  ;;  %v3017_v17 = vld [vmem:[#allocation6 + $0x44] ss:$16 sps:$4 sm:$0xff]   ;;  %v3019_v18 = vld [vmem:[#allocation6 + $0x40] ss:$16 sps:$4 sm:$0xff]  }
  0x63   :  { %v3023_v19 = vld [vmem:[#allocation6 + $0x64] ss:$16 sps:$4 sm:$0xff]   ;;  %v2998_v20 = vld [vmem:[#allocation4 + $0xa0] ss:$16 sps:$4 sm:$0xff]  }
  0x64   :  { %514 = vmatpush1.bf16.msra.mxu1 %v3013_v14  ;;  %v2999_v21 = vld [vmem:[#allocation4 + $0xc4] ss:$16 sps:$4 sm:$0xff]   ;;  %v3025_v22 = vld [vmem:[#allocation6 + $0x60] ss:$16 sps:$4 sm:$0xff]  }
  0x65   :  { %1582 = vmatpush1.bf16.msra.mxu0 %v2989_v7  ;;  %515 = vmatprep.subr.bf16.mxu1 %v3017_v17  ;;  %v3029_v23 = vld [vmem:[#allocation6 + $0x84] ss:$16 sps:$4 sm:$0xff]   ;;  %v3001_v24 = vld [vmem:[#allocation4 + $0xc0] ss:$16 sps:$4 sm:$0xff]  }
  0x66   :  { %1583 = vmatprep.subr.bf16.mxu0 %v2990_v8  ;;  %v3002_v25 = vld [vmem:[#allocation4 + $0xe4] ss:$16 sps:$4 sm:$0xff]   ;;  %v3031_v26 = vld [vmem:[#allocation6 + $0x80] ss:$16 sps:$4 sm:$0xff]  }
  0x67   :  { %v3035_v27 = vld [vmem:[#allocation6 + $0xa4] ss:$16 sps:$4 sm:$0xff]   ;;  %v3004_v28 = vld [vmem:[#allocation4 + $0xe0] ss:$16 sps:$4 sm:$0xff]  }
  0x68   :  { %516 = vmatpush1.bf16.msra.mxu1 %v3019_v18  ;;  %v3008_v29 = vld [vmem:[#allocation4 + $0x104] ss:$16 sps:$4 sm:$0xff]   ;;  %v3037_v30 = vld [vmem:[#allocation6 + $0xa0] ss:$16 sps:$4 sm:$0xff]  }
  0x69   :  { %1584 = vmatpush1.bf16.msra.mxu0 %v2992_v9  ;;  %517 = vmatprep.subr.bf16.mxu1 %v3023_v19  ;;  %v3041_v31 = vld [vmem:[#allocation6 + $0xc4] ss:$16 sps:$4 sm:$0xff]   ;;  %v3010_v32 = vld [vmem:[#allocation4 + $0x100] ss:$16 sps:$4 sm:$0xff]  }
  0x6a   :  { %1585 = vmatprep.subr.bf16.mxu0 %v2993_v12  ;;  %v3014_v33 = vld [vmem:[#allocation4 + $0x124] ss:$16 sps:$4 sm:$0xff]   ;;  %v3043_v35 = vld [vmem:[#allocation6 + $0xc0] ss:$16 sps:$4 sm:$0xff]  }
  0x6b   :  { %v110_v34 = vld [vmem:[#allocation2 + $0x8] sm:$0xff] }
  0x6c   :  { %518 = vmatpush1.bf16.msra.mxu1 %v3025_v22  ;;  %v3696_v36 = vpack.c.bf16 %v110_v34, %v110_v34  ;;  %v3047_v37 = vld [vmem:[#allocation6 + $0xe4] ss:$16 sps:$4 sm:$0xff]   ;;  %v3016_v38 = vld [vmem:[#allocation4 + $0x120] ss:$16 sps:$4 sm:$0xff]  }
  0x6d   :  { %1586 = vmatpush1.bf16.msra.mxu0 %v2995_v15  ;;  %519 = vmatprep.subr.bf16.mxu1 %v3029_v23  ;;  %v3020_v39 = vld [vmem:[#allocation4 + $0x144] ss:$16 sps:$4 sm:$0xff]   ;;  %v3049_v40 = vld [vmem:[#allocation6 + $0xe0] ss:$16 sps:$4 sm:$0xff]  }
  0x6e   :  { %1587 = vmatprep.subr.bf16.mxu0 %v2996_v16  ;;  %1609 = vmatprep.mubr.bf16.mxu0 %v3696_v36  ;;  %v3022_v42 = vld [vmem:[#allocation4 + $0x140] ss:$16 sps:$4 sm:$0xff]   ;;  %v3026_v43 = vld [vmem:[#allocation4 + $0x164] ss:$16 sps:$4 sm:$0xff]  }
  0x6f   :  { %v3028_v44 = vld [vmem:[#allocation4 + $0x160] ss:$16 sps:$4 sm:$0xff]   ;;  %v3032_v45 = vld [vmem:[#allocation4 + $0x184] ss:$16 sps:$4 sm:$0xff]  }
  0x70   :  { %520 = vmatpush1.bf16.msra.mxu1 %v3031_v26  ;;  %v3034_v46 = vld [vmem:[#allocation4 + $0x180] ss:$16 sps:$4 sm:$0xff]   ;;  %v3038_v47 = vld [vmem:[#allocation4 + $0x1a4] ss:$16 sps:$4 sm:$0xff]  }
  0x71   :  { %1588 = vmatpush1.bf16.msra.mxu0 %v2998_v20  ;;  %521 = vmatprep.subr.bf16.mxu1 %v3035_v27  ;;  %v3040_v48 = vld [vmem:[#allocation4 + $0x1a0] ss:$16 sps:$4 sm:$0xff]   ;;  %v3044_v49 = vld [vmem:[#allocation4 + $0x1c4] ss:$16 sps:$4 sm:$0xff]   ;;  %v113_v27 = vld [vmem:[#allocation2 + $0x20] sm:$0xff] }
  0x72   :  { %1589 = vmatprep.subr.bf16.mxu0 %v2999_v21  ;;  %v3046_v50 = vld [vmem:[#allocation4 + $0x1c0] ss:$16 sps:$4 sm:$0xff]   ;;  %v3050_v51 = vld [vmem:[#allocation4 + $0x1e4] ss:$16 sps:$4 sm:$0xff]  }
  0x73   :  { %v3052_v52 = vld [vmem:[#allocation4 + $0x1e0] ss:$16 sps:$4 sm:$0xff]   ;;  %v3082_v54 = vld [vmem:[#allocation4 + $0x404] ss:$16 sps:$4 sm:$0xff]  }
  0x74   :  { %522 = vmatpush1.bf16.msra.mxu1 %v3037_v30  ;;  %v3080_v56 = vld [vmem:[#allocation4 + $0x400] ss:$16 sps:$4 sm:$0xff]   ;;  %v3088_v57 = vld [vmem:[#allocation4 + $0x424] ss:$16 sps:$4 sm:$0xff]   ;;  %v3053_v30 = vld [vmem:[#allocation6 + $0x8] ss:$16 sps:$4 sm:$0xff]  }
  0x75   :  { %1590 = vmatpush1.bf16.msra.mxu0 %v3001_v24  ;;  %523 = vmatprep.subr.bf16.mxu1 %v3041_v31  ;;  %v3086_v58 = vld [vmem:[#allocation4 + $0x420] ss:$16 sps:$4 sm:$0xff]   ;;  %v3094_v59 = vld [vmem:[#allocation4 + $0x444] ss:$16 sps:$4 sm:$0xff]   ;;  %v3058_v31 = vld [vmem:[#allocation6 + $0x2c] ss:$16 sps:$4 sm:$0xff]  }
  0x76   :  { %1591 = vmatprep.subr.bf16.mxu0 %v3002_v25  ;;  %v3092_v60 = vld [vmem:[#allocation4 + $0x440] ss:$16 sps:$4 sm:$0xff]   ;;  %v3100_v61 = vld [vmem:[#allocation4 + $0x464] ss:$16 sps:$4 sm:$0xff]   ;;  %v100_v25 = vlaneseq }
  0x77   :  { %v3098_v62 = vld [vmem:[#allocation4 + $0x460] ss:$16 sps:$4 sm:$0xff]   ;;  %v3106_v63 = vld [vmem:[#allocation4 + $0x484] ss:$16 sps:$4 sm:$0xff]  }
  0x78   :  { %524 = vmatpush1.bf16.msra.mxu1 %v3043_v35  ;;  %v3104_v1 = vld [vmem:[#allocation4 + $0x480] ss:$16 sps:$4 sm:$0xff]   ;;  %v3112_v2 = vld [vmem:[#allocation4 + $0x4a4] ss:$16 sps:$4 sm:$0xff]   ;;  %v3179_v35 = vld [vmem:[#allocation4 + $0x208] ss:$16 sps:$4 sm:$0xff]  }
  0x79   :  { %1592 = vmatpush1.bf16.msra.mxu0 %v3004_v28  ;;  %525 = vmatprep.subr.bf16.mxu1 %v3047_v37  ;;  %v3110_v3 = vld [vmem:[#allocation4 + $0x4a0] ss:$16 sps:$4 sm:$0xff]   ;;  %v3118_v4 = vld [vmem:[#allocation4 + $0x4c4] ss:$16 sps:$4 sm:$0xff]   ;;  %v3181_v28 = vld [vmem:[#allocation4 + $0x20c] ss:$16 sps:$4 sm:$0xff]  }
  0x7a   :  { %1593 = vmatprep.subr.bf16.mxu0 %v3008_v29  ;;  %v3116_v5 = vld [vmem:[#allocation4 + $0x4c0] ss:$16 sps:$4 sm:$0xff]   ;;  %v3124_v6 = vld [vmem:[#allocation4 + $0x4e4] ss:$16 sps:$4 sm:$0xff]   ;;  %v101_v29 = vand.u32 127, %v100_v25 }
  0x7b   :  { %v3122_v7 = vld [vmem:[#allocation4 + $0x4e0] ss:$16 sps:$4 sm:$0xff]   ;;  %v3130_v8 = vld [vmem:[#allocation4 + $0x504] ss:$16 sps:$4 sm:$0xff]   ;;  %v3187_v37 = vld [vmem:[#allocation4 + $0x22c] ss:$16 sps:$4 sm:$0xff]  }
  0x7c   :  { %526 = vmatpush1.bf16.msra.mxu1 %v3049_v40  ;;  %v3128_v9 = vld [vmem:[#allocation4 + $0x500] ss:$16 sps:$4 sm:$0xff]   ;;  %v3136_v10 = vld [vmem:[#allocation4 + $0x524] ss:$16 sps:$4 sm:$0xff]   ;;  %v3056_v40 = vld [vmem:[#allocation6 + $0x28] ss:$16 sps:$4 sm:$0xff]  }
  0x7d   :  { %1594 = vmatpush1.bf16.msra.mxu0 %v3010_v32  ;;  %552 = vmatprep.subr.bf16.mxu1 %v3055_v41  ;;  %v114_v11 = vld [vmem:[#allocation2 + $0x28] sm:$0xff]  ;;  %v3706_v32 = vpack.c.bf16 %v113_v27, %v113_v27  ;;  %v112_v34 = vld [vmem:[#allocation2 + $0x18] sm:$0xff]  ;;  %v3061_v41 = vld [vmem:[#allocation6 + $0x4c] ss:$16 sps:$4 sm:$0xff]  }
  0x7e   :  { %1595 = vmatprep.subr.bf16.mxu0 %v3014_v33  ;;  %v3702_v12 = vpack.c.bf16 %v114_v11, %v114_v11  ;;  %v3134_v13 = vld [vmem:[#allocation4 + $0x520] ss:$16 sps:$4 sm:$0xff]   ;;  %v3142_v14 = vld [vmem:[#allocation4 + $0x544] ss:$16 sps:$4 sm:$0xff]   ;;  %v3251_v27 = vld [vmem:[#allocation4 + $0x388] ss:$16 sps:$4 sm:$0xff]  }
  0x7f   :  { %v3140_v15 = vld [vmem:[#allocation4 + $0x540] ss:$16 sps:$4 sm:$0xff]   ;;  %v3148_v16 = vld [vmem:[#allocation4 + $0x564] ss:$16 sps:$4 sm:$0xff]  }
  0x80   :  { %v3146_v17 = vld [vmem:[#allocation4 + $0x560] ss:$16 sps:$4 sm:$0xff]   ;;  %v3154_v18 = vld [vmem:[#allocation4 + $0x584] ss:$16 sps:$4 sm:$0xff]  }
  0x81   :  { %1596 = vmatpush1.bf16.msra.mxu0 %v3016_v38  ;;  %v3152_v19 = vld [vmem:[#allocation4 + $0x580] ss:$16 sps:$4 sm:$0xff]   ;;  %v3160_v20 = vld [vmem:[#allocation4 + $0x5a4] ss:$16 sps:$4 sm:$0xff]   ;;  %v3271_v38 = vld [vmem:[#allocation4 + $0x3ec] ss:$16 sps:$4 sm:$0xff]  }
  0x82   :  { %1597 = vmatprep.subr.bf16.mxu0 %v3020_v39  ;;  %v3158_v21 = vld [vmem:[#allocation4 + $0x5a0] ss:$16 sps:$4 sm:$0xff]   ;;  %v3166_v22 = vld [vmem:[#allocation4 + $0x5c4] ss:$16 sps:$4 sm:$0xff]   ;;  %v3567_v39 = vmov 1.0|1.0  }
  0x83   :  { %v3164_v23 = vld [vmem:[#allocation4 + $0x5c0] ss:$16 sps:$4 sm:$0xff]   ;;  %v3172_v24 = vld [vmem:[#allocation4 + $0x5e4] ss:$16 sps:$4 sm:$0xff]  }
  0x84   :  { %v3170_v26 = vld [vmem:[#allocation4 + $0x5e0] ss:$16 sps:$4 sm:$0xff]  }
  0x85   :  { %1598 = vmatpush1.bf16.msra.mxu0 %v3022_v42  ;;  %v3717_v42 = vpack.c.bf16 %v112_v34, %v112_v34  ;;  %v3083_v11 = vld [vmem:[#allocation4 + $0x220] ss:$16 sps:$4 sm:$0xff]  }
  0x86   :  { %1599 = vmatprep.subr.bf16.mxu0 %v3026_v43  ;;  %v3185_v43 = vld [vmem:[#allocation4 + $0x228] ss:$16 sps:$4 sm:$0xff]   ;;  %v3113_v34 = vld [vmem:[#allocation4 + $0x2c0] ss:$16 sps:$4 sm:$0xff]  }
  0x89   :  { %1600 = vmatpush1.bf16.msra.mxu0 %v3028_v44  ;;  %v3193_v44 = vld [vmem:[#allocation4 + $0x24c] ss:$16 sps:$4 sm:$0xff]  }
  0x8a   :  { %1601 = vmatprep.subr.bf16.mxu0 %v3032_v45  ;;  %v3059_v45 = vld [vmem:[#allocation6 + $0x48] ss:$16 sps:$4 sm:$0xff]  }
  0x8d   :  { %1602 = vmatpush1.bf16.msra.mxu0 %v3034_v46  ;;  %v3064_v46 = vld [vmem:[#allocation6 + $0x6c] ss:$16 sps:$4 sm:$0xff]  }
  0x8e   :  { %1603 = vmatprep.subr.bf16.mxu0 %v3038_v47  ;;  %v3191_v47 = vld [vmem:[#allocation4 + $0x248] ss:$16 sps:$4 sm:$0xff]  }
  0x91   :  { %1604 = vmatpush1.bf16.msra.mxu0 %v3040_v48  ;;  %v3199_v48 = vld [vmem:[#allocation4 + $0x26c] ss:$16 sps:$4 sm:$0xff]  }
  0x92   :  { %1605 = vmatprep.subr.bf16.mxu0 %v3044_v49  ;;  %v3062_v49 = vld [vmem:[#allocation6 + $0x68] ss:$16 sps:$4 sm:$0xff]  }
  0x95   :  { %1606 = vmatpush1.bf16.msra.mxu0 %v3046_v50  ;;  %v3067_v50 = vld [vmem:[#allocation6 + $0x8c] ss:$16 sps:$4 sm:$0xff]  }
  0x96   :  { %1607 = vmatprep.subr.bf16.mxu0 %v3050_v51  ;;  %v3197_v51 = vld [vmem:[#allocation4 + $0x268] ss:$16 sps:$4 sm:$0xff]  }
  0x99   :  { %1608 = vmatpush1.bf16.msra.mxu0 %v3052_v52  ;;  %v3205_v52 = vld [vmem:[#allocation4 + $0x28c] ss:$16 sps:$4 sm:$0xff]  }
  0x9a   :  { %1659 = vmatprep.subr.bf16.mxu0 %v3082_v54  ;;  %v3070_v54 = vld [vmem:[#allocation6 + $0xac] ss:$16 sps:$4 sm:$0xff]  }
  0x9c   :  { %1610 = vmatmul.mubr.bf16.vlgmr.msra.gmra.mrb[0].mxu0 %v3699_v55 }
  0x9d   :  { %1660 = vmatpush1.bf16.msra.mxu0 %v3080_v56  ;;  %1691 = vmatprep.mubr.bf16.mxu0 %v3702_v12  ;;  %v3203_v56 = vld [vmem:[#allocation4 + $0x288] ss:$16 sps:$4 sm:$0xff]  }
  0x9e   :  { %1661 = vmatprep.subr.bf16.mxu0 %v3088_v57  ;;  %v3211_v57 = vld [vmem:[#allocation4 + $0x2ac] ss:$16 sps:$4 sm:$0xff]  }
  0xa1   :  { %1662 = vmatpush1.bf16.msra.mxu0 %v3086_v58  ;;  %v3068_v58 = vld [vmem:[#allocation6 + $0xa8] ss:$16 sps:$4 sm:$0xff]  }
  0xa2   :  { %1663 = vmatprep.subr.bf16.mxu0 %v3094_v59  ;;  %v3073_v59 = vld [vmem:[#allocation6 + $0xcc] ss:$16 sps:$4 sm:$0xff]  }
  0xa5   :  { %1664 = vmatpush1.bf16.msra.mxu0 %v3092_v60  ;;  %v3209_v60 = vld [vmem:[#allocation4 + $0x2a8] ss:$16 sps:$4 sm:$0xff]  }
  0xa6   :  { %1665 = vmatprep.subr.bf16.mxu0 %v3100_v61  ;;  %v3217_v61 = vld [vmem:[#allocation4 + $0x2cc] ss:$16 sps:$4 sm:$0xff]  }
  0xa9   :  { %1666 = vmatpush1.bf16.msra.mxu0 %v3098_v62  ;;  %v3071_v62 = vld [vmem:[#allocation6 + $0xc8] ss:$16 sps:$4 sm:$0xff]  }
  0xaa   :  { %1667 = vmatprep.subr.bf16.mxu0 %v3106_v63  ;;  %v3076_v63 = vld [vmem:[#allocation6 + $0xec] ss:$16 sps:$4 sm:$0xff]  }
  0xad   :  { %1668 = vmatpush1.bf16.msra.mxu0 %v3104_v1  ;;  %v3215_v1 = vld [vmem:[#allocation4 + $0x2c8] ss:$16 sps:$4 sm:$0xff]  }
  0xae   :  { %1669 = vmatprep.subr.bf16.mxu0 %v3112_v2  ;;  %v3223_v2 = vld [vmem:[#allocation4 + $0x2ec] ss:$16 sps:$4 sm:$0xff]  }
  0xb1   :  { %1670 = vmatpush1.bf16.msra.mxu0 %v3110_v3  ;;  %v3074_v3 = vld [vmem:[#allocation6 + $0xe8] ss:$16 sps:$4 sm:$0xff]  }
  0xb2   :  { %1671 = vmatprep.subr.bf16.mxu0 %v3118_v4  ;;  %v3079_v4 = vld [vmem:[#allocation4 + $0x204] ss:$16 sps:$4 sm:$0xff]  }
  0xb5   :  { %1672 = vmatpush1.bf16.msra.mxu0 %v3116_v5  ;;  %v3221_v5 = vld [vmem:[#allocation4 + $0x2e8] ss:$16 sps:$4 sm:$0xff]  }
  0xb6   :  { %1673 = vmatprep.subr.bf16.mxu0 %v3124_v6  ;;  %v3229_v6 = vld [vmem:[#allocation4 + $0x30c] ss:$16 sps:$4 sm:$0xff]  }
  0xb9   :  { %1674 = vmatpush1.bf16.msra.mxu0 %v3122_v7  ;;  %v3077_v7 = vld [vmem:[#allocation4 + $0x200] ss:$16 sps:$4 sm:$0xff]  }
  0xba   :  { %1675 = vmatprep.subr.bf16.mxu0 %v3130_v8  ;;  %v3085_v8 = vld [vmem:[#allocation4 + $0x224] ss:$16 sps:$4 sm:$0xff]  }
  0xbd   :  { %1676 = vmatpush1.bf16.msra.mxu0 %v3128_v9  ;;  %v3227_v9 = vld [vmem:[#allocation4 + $0x308] ss:$16 sps:$4 sm:$0xff]  }
  0xbe   :  { %1677 = vmatprep.subr.bf16.mxu0 %v3136_v10  ;;  %v3235_v10 = vld [vmem:[#allocation4 + $0x32c] ss:$16 sps:$4 sm:$0xff]  }
  0xc1   :  { %1678 = vmatpush1.bf16.msra.mxu0 %v3134_v13  ;;  %v3091_v13 = vld [vmem:[#allocation4 + $0x244] ss:$16 sps:$4 sm:$0xff]  }
  0xc2   :  { %1679 = vmatprep.subr.bf16.mxu0 %v3142_v14  ;;  %v3233_v14 = vld [vmem:[#allocation4 + $0x328] ss:$16 sps:$4 sm:$0xff]  }
  0xc5   :  { %1680 = vmatpush1.bf16.msra.mxu0 %v3140_v15  ;;  %v3241_v15 = vld [vmem:[#allocation4 + $0x34c] ss:$16 sps:$4 sm:$0xff]  }
  0xc6   :  { %1681 = vmatprep.subr.bf16.mxu0 %v3148_v16  ;;  %v3089_v16 = vld [vmem:[#allocation4 + $0x240] ss:$16 sps:$4 sm:$0xff]  }
  0xc9   :  { %1682 = vmatpush1.bf16.msra.mxu0 %v3146_v17  ;;  %v3097_v17 = vld [vmem:[#allocation4 + $0x264] ss:$16 sps:$4 sm:$0xff]  }
  0xca   :  { %1683 = vmatprep.subr.bf16.mxu0 %v3154_v18  ;;  %v3239_v18 = vld [vmem:[#allocation4 + $0x348] ss:$16 sps:$4 sm:$0xff]  }
  0xcd   :  { %1684 = vmatpush1.bf16.msra.mxu0 %v3152_v19  ;;  %v3095_v19 = vld [vmem:[#allocation4 + $0x260] ss:$16 sps:$4 sm:$0xff]  }
  0xce   :  { %1685 = vmatprep.subr.bf16.mxu0 %v3160_v20  ;;  %v3247_v20 = vld [vmem:[#allocation4 + $0x36c] ss:$16 sps:$4 sm:$0xff]  }
  0xd1   :  { %1686 = vmatpush1.bf16.msra.mxu0 %v3158_v21  ;;  %v3103_v21 = vld [vmem:[#allocation4 + $0x284] ss:$16 sps:$4 sm:$0xff]  }
  0xd2   :  { %1687 = vmatprep.subr.bf16.mxu0 %v3166_v22  ;;  %v3245_v22 = vld [vmem:[#allocation4 + $0x368] ss:$16 sps:$4 sm:$0xff]  }
  0xd5   :  { %1688 = vmatpush1.bf16.msra.mxu0 %v3164_v23  ;;  %v3253_v23 = vld [vmem:[#allocation4 + $0x38c] ss:$16 sps:$4 sm:$0xff]  }
  0xd6   :  { %1689 = vmatprep.subr.bf16.mxu0 %v3172_v24  ;;  %v3101_v24 = vld [vmem:[#allocation4 + $0x280] ss:$16 sps:$4 sm:$0xff]  }
  0xd9   :  { %1690 = vmatpush1.bf16.msra.mxu0 %v3170_v26  ;;  %v3109_v26 = vld [vmem:[#allocation4 + $0x2a4] ss:$16 sps:$4 sm:$0xff]  }
  0xda   :  { %1782 = vmatprep.subr.bf16.mxu0 %v3181_v28  ;;  %v3259_v28 = vld [vmem:[#allocation4 + $0x3ac] ss:$16 sps:$4 sm:$0xff]  }
  0xdb   :  { %v104_v33 = vpop.permute.xlu0 %103 }
  0xdc   :  { %vm105_vm0 = vcmp.eq.s32.totalorder %v104_v33, %v101_v29  ;;  %1692 = vmatmul.mubr.bf16.vlgmr.msra.gmra.mrb[4].mxu0 %v3706_v32  ;;  %v3107_v29 = vld [vmem:[#allocation4 + $0x2a0] ss:$16 sps:$4 sm:$0xff]   ;;  %v3265_v33 = vld [vmem:[#allocation4 + $0x3cc] ss:$16 sps:$4 sm:$0xff]  }
  0xdd   :  { %vm3708_vm1 = vmpackc.low %vm105_vm0, %vm105_vm0  ;;  %1783 = vmatpush1.bf16.msra.mxu0 %v3179_v35  ;;  %1814 = vmatprep.mubr.bf16.mxu0 %v3717_v42  ;;  %v3121_v35 = vld [vmem:[#allocation4 + $0x2e4] ss:$16 sps:$4 sm:$0xff]  }
  0xde   :  { %2656 = vmatmul.mubr.msk.bf16.vlgmr.msra.gmra.mrb[0].mxu1 %vm3708_vm1, %v3567_v39  ;;  %1784 = vmatprep.subr.bf16.mxu0 %v3187_v37  ;;  %v3263_v37 = vld [vmem:[#allocation4 + $0x3c8] ss:$16 sps:$4 sm:$0xff]  }
  0xdf   :  { %553 = vmatpush1.bf16.msra.mxu1 %v3053_v30  ;;  %584 = vmatprep.mubr.bf16.mxu1 %v3566_v0  ;;  %v3115_v30 = vld [vmem:[#allocation4 + $0x2c4] ss:$16 sps:$4 sm:$0xff]  }
  0xe0   :  { %554 = vmatprep.subr.bf16.mxu1 %v3058_v31  ;;  %v3257_v31 = vld [vmem:[#allocation4 + $0x3a8] ss:$16 sps:$4 sm:$0xff]  }
  0xe1   :  { %1785 = vmatpush1.bf16.msra.mxu0 %v3185_v43  ;;  %v3125_v43 = vld [vmem:[#allocation4 + $0x300] ss:$16 sps:$4 sm:$0xff]  }
  0xe2   :  { %1786 = vmatprep.subr.bf16.mxu0 %v3193_v44  ;;  %v3133_v44 = vld [vmem:[#allocation4 + $0x324] ss:$16 sps:$4 sm:$0xff]  }
  0xe3   :  { %555 = vmatpush1.bf16.msra.mxu1 %v3056_v40  ;;  %v3127_v40 = vld [vmem:[#allocation4 + $0x304] ss:$16 sps:$4 sm:$0xff]  }
  0xe4   :  { %556 = vmatprep.subr.bf16.mxu1 %v3061_v41  ;;  %v3269_v41 = vld [vmem:[#allocation4 + $0x3e8] ss:$16 sps:$4 sm:$0xff]  }
  0xe5   :  { %1787 = vmatpush1.bf16.msra.mxu0 %v3191_v47  ;;  %v3139_v47 = vld [vmem:[#allocation4 + $0x344] ss:$16 sps:$4 sm:$0xff]  }
  0xe6   :  { %1788 = vmatprep.subr.bf16.mxu0 %v3199_v48  ;;  %v3137_v48 = vld [vmem:[#allocation4 + $0x340] ss:$16 sps:$4 sm:$0xff]  }
  0xe7   :  { %557 = vmatpush1.bf16.msra.mxu1 %v3059_v45 }
  0xe8   :  { %558 = vmatprep.subr.bf16.mxu1 %v3064_v46  ;;  %v3131_v46 = vld [vmem:[#allocation4 + $0x320] ss:$16 sps:$4 sm:$0xff]  }
  0xe9   :  { %1789 = vmatpush1.bf16.msra.mxu0 %v3197_v51  ;;  %v3151_v51 = vld [vmem:[#allocation4 + $0x384] ss:$16 sps:$4 sm:$0xff]  }
  0xea   :  { %1790 = vmatprep.subr.bf16.mxu0 %v3205_v52  ;;  %v3149_v52 = vld [vmem:[#allocation4 + $0x380] ss:$16 sps:$4 sm:$0xff]  }
  0xeb   :  { %559 = vmatpush1.bf16.msra.mxu1 %v3062_v49  ;;  %v3145_v49 = vld [vmem:[#allocation4 + $0x364] ss:$16 sps:$4 sm:$0xff]  }
  0xec   :  { %560 = vmatprep.subr.bf16.mxu1 %v3067_v50  ;;  %v3143_v50 = vld [vmem:[#allocation4 + $0x360] ss:$16 sps:$4 sm:$0xff]  }
  0xed   :  { %1791 = vmatpush1.bf16.msra.mxu0 %v3203_v56  ;;  %v3163_v56 = vld [vmem:[#allocation4 + $0x3c4] ss:$16 sps:$4 sm:$0xff]  }
  0xee   :  { %1792 = vmatprep.subr.bf16.mxu0 %v3211_v57  ;;  %v3161_v57 = vld [vmem:[#allocation4 + $0x3c0] ss:$16 sps:$4 sm:$0xff]  }
  0xef   :  { %561 = vmatpush1.bf16.msra.mxu1 %v3065_v53  ;;  %v3157_v53 = vld [vmem:[#allocation4 + $0x3a4] ss:$16 sps:$4 sm:$0xff]  }
  0xf0   :  { %562 = vmatprep.subr.bf16.mxu1 %v3070_v54  ;;  %v3155_v54 = vld [vmem:[#allocation4 + $0x3a0] ss:$16 sps:$4 sm:$0xff]  }
  0xf1   :  { %1793 = vmatpush1.bf16.msra.mxu0 %v3209_v60  ;;  %v3175_v60 = vld [vmem:[#allocation4 + $0x604] ss:$16 sps:$4 sm:$0xff]  }
  0xf2   :  { %1794 = vmatprep.subr.bf16.mxu0 %v3217_v61  ;;  %v3173_v61 = vld [vmem:[#allocation4 + $0x600] ss:$16 sps:$4 sm:$0xff]  }
  0xf3   :  { %563 = vmatpush1.bf16.msra.mxu1 %v3068_v58  ;;  %v3169_v58 = vld [vmem:[#allocation4 + $0x3e4] ss:$16 sps:$4 sm:$0xff]  }
  0xf4   :  { %564 = vmatprep.subr.bf16.mxu1 %v3073_v59  ;;  %v3167_v59 = vld [vmem:[#allocation4 + $0x3e0] ss:$16 sps:$4 sm:$0xff]  }
  0xf5   :  { %1795 = vmatpush1.bf16.msra.mxu0 %v3215_v1 }
  0xf6   :  { %1796 = vmatprep.subr.bf16.mxu0 %v3223_v2  ;;  %v3176_v2 = vld [vmem:[#allocation4 + $0x8] ss:$16 sps:$4 sm:$0xff]  }
  0xf7   :  { %565 = vmatpush1.bf16.msra.mxu1 %v3071_v62  ;;  %v3178_v62 = vld [vmem:[#allocation4 + $0xc] ss:$16 sps:$4 sm:$0xff]  }
  0xf8   :  { %566 = vmatprep.subr.bf16.mxu1 %v3076_v63  ;;  %v115_v63 = vld [vmem:[#allocation2 + $0x30] sm:$0xff] }
  0xf9   :  { %1797 = vmatpush1.bf16.msra.mxu0 %v3221_v5  ;;  %v3725_v1 = vpack.c.bf16 %v115_v63, %v115_v63  ;;  %v3190_v5 = vld [vmem:[#allocation4 + $0x4c] ss:$16 sps:$4 sm:$0xff]  }
  0xfa   :  { %1798 = vmatprep.subr.bf16.mxu0 %v3229_v6  ;;  %v3188_v6 = vld [vmem:[#allocation4 + $0x48] ss:$16 sps:$4 sm:$0xff]   ;;  %v3274_v63 = vld [vmem:[#allocation4 + $0x40c] ss:$16 sps:$4 sm:$0xff]  }
  0xfb   :  { %567 = vmatpush1.bf16.msra.mxu1 %v3074_v3  ;;  %v3184_v3 = vld [vmem:[#allocation4 + $0x2c] ss:$16 sps:$4 sm:$0xff]  }
  0xfc   :  { %1618 = vmatprep.subr.bf16.mxu1 %v3079_v4  ;;  %v3182_v4 = vld [vmem:[#allocation4 + $0x28] ss:$16 sps:$4 sm:$0xff]  }
  0xfd   :  { %1799 = vmatpush1.bf16.msra.mxu0 %v3227_v9  ;;  %v3202_v9 = vld [vmem:[#allocation4 + $0x8c] ss:$16 sps:$4 sm:$0xff]  }
  0xfe   :  { %2658 = vmatmul.mubr.msk.bf16.vlgmr.msra.gmra.mrb[4].mxu1 %vm3708_vm1, %v3567_v39  ;;  %1800 = vmatprep.subr.bf16.mxu0 %v3235_v10  ;;  %v3119_v39 = vld [vmem:[#allocation4 + $0x2e0] ss:$16 sps:$4 sm:$0xff]   ;;  %v3200_v10 = vld [vmem:[#allocation4 + $0x88] ss:$16 sps:$4 sm:$0xff]  }
  0xff   :  { %1619 = vmatpush1.bf16.msra.mxu1 %v3077_v7  ;;  %1650 = vmatprep.mubr.bf16.mxu1 %v3717_v42  ;;  %v111_v42 = vld [vmem:[#allocation2 + $0x10] sm:$0xff] }
 0x100   :  { %1620 = vmatprep.subr.bf16.mxu1 %v3085_v8  ;;  %v118_v45 = vpack.c.bf16 %v111_v42, %v111_v42  ;;  %v3196_v7 = vld [vmem:[#allocation4 + $0x6c] ss:$16 sps:$4 sm:$0xff]   ;;  %v3194_v8 = vld [vmem:[#allocation4 + $0x68] ss:$16 sps:$4 sm:$0xff]  }
 0x101   :  { %1801 = vmatpush1.bf16.msra.mxu0 %v3233_v14  ;;  %v3325_v14 = vld [vmem:[#allocation7 + $0x4] ss:$8 sps:$4 sm:$0xff]   ;;  %v3242_v42 = vld [vmem:[#allocation4 + $0x168] ss:$16 sps:$4 sm:$0xff]  }
 0x102   :  { %1802 = vmatprep.subr.bf16.mxu0 %v3241_v15  ;;  %v3328_v15 = vld [vmem:[#allocation7 + $0x14] ss:$8 sps:$4 sm:$0xff]  }
 0x103   :  { %1621 = vmatpush1.bf16.msra.mxu1 %v3083_v11  ;;  %v3208_v11 = vld [vmem:[#allocation4 + $0xac] ss:$16 sps:$4 sm:$0xff]  }
 0x104   :  { %1622 = vmatprep.subr.bf16.mxu1 %v3091_v13  ;;  %v3323_v13 = vld [vmem:[#allocation7] ss:$8 sps:$4 sm:$0xff]  }
 0x105   :  { %1803 = vmatpush1.bf16.msra.mxu0 %v3239_v18  ;;  %v3331_v18 = vld [vmem:[#allocation7 + $0x24] ss:$8 sps:$4 sm:$0xff]  }
 0x106   :  { %1804 = vmatprep.subr.bf16.mxu0 %v3247_v20  ;;  %v3329_v20 = vld [vmem:[#allocation7 + $0x20] ss:$8 sps:$4 sm:$0xff]  }
 0x107   :  { %1623 = vmatpush1.bf16.msra.mxu1 %v3089_v16  ;;  %v3326_v16 = vld [vmem:[#allocation7 + $0x10] ss:$8 sps:$4 sm:$0xff]  }
 0x108   :  { %1624 = vmatprep.subr.bf16.mxu1 %v3097_v17  ;;  %v3214_v17 = vld [vmem:[#allocation4 + $0xcc] ss:$16 sps:$4 sm:$0xff]  }
 0x109   :  { %1805 = vmatpush1.bf16.msra.mxu0 %v3245_v22  ;;  %v3334_v22 = vld [vmem:[#allocation7 + $0x34] ss:$8 sps:$4 sm:$0xff]  }
 0x10a   :  { %1806 = vmatprep.subr.bf16.mxu0 %v3253_v23  ;;  %v3218_v23 = vld [vmem:[#allocation4 + $0xe8] ss:$16 sps:$4 sm:$0xff]  }
 0x10b   :  { %1625 = vmatpush1.bf16.msra.mxu1 %v3095_v19  ;;  %v3212_v19 = vld [vmem:[#allocation4 + $0xc8] ss:$16 sps:$4 sm:$0xff]  }
 0x10c   :  { %1626 = vmatprep.subr.bf16.mxu1 %v3103_v21  ;;  %v3220_v21 = vld [vmem:[#allocation4 + $0xec] ss:$16 sps:$4 sm:$0xff]  }
 0x10d   :  { %1807 = vmatpush1.bf16.msra.mxu0 %v3251_v27  ;;  %v3337_v27 = vld [vmem:[#allocation7 + $0x44] ss:$8 sps:$4 sm:$0xff]  }
 0x10e   :  { %1808 = vmatprep.subr.bf16.mxu0 %v3259_v28  ;;  %v3224_v28 = vld [vmem:[#allocation4 + $0x108] ss:$16 sps:$4 sm:$0xff]  }
 0x10f   :  { %1627 = vmatpush1.bf16.msra.mxu1 %v3101_v24  ;;  %v3332_v24 = vld [vmem:[#allocation7 + $0x30] ss:$8 sps:$4 sm:$0xff]  }
 0x110   :  { %1628 = vmatprep.subr.bf16.mxu1 %v3109_v26  ;;  %v3226_v26 = vld [vmem:[#allocation4 + $0x10c] ss:$16 sps:$4 sm:$0xff]  }
 0x111   :  { %1809 = vmatpush1.bf16.msra.mxu0 %v3257_v31  ;;  %v3340_v31 = vld [vmem:[#allocation7 + $0x54] ss:$8 sps:$4 sm:$0xff]  }
 0x112   :  { %1810 = vmatprep.subr.bf16.mxu0 %v3265_v33  ;;  %v3230_v33 = vld [vmem:[#allocation4 + $0x128] ss:$16 sps:$4 sm:$0xff]  }
 0x113   :  { %1629 = vmatpush1.bf16.msra.mxu1 %v3107_v29  ;;  %v3335_v29 = vld [vmem:[#allocation7 + $0x40] ss:$8 sps:$4 sm:$0xff]  }
 0x114   :  { %1630 = vmatprep.subr.bf16.mxu1 %v3115_v30  ;;  %v3232_v30 = vld [vmem:[#allocation4 + $0x12c] ss:$16 sps:$4 sm:$0xff]  }
 0x115   :  { %1811 = vmatpush1.bf16.msra.mxu0 %v3263_v37  ;;  %v3343_v37 = vld [vmem:[#allocation7 + $0x64] ss:$8 sps:$4 sm:$0xff]  }
 0x116   :  { %1812 = vmatprep.subr.bf16.mxu0 %v3271_v38  ;;  %v3236_v38 = vld [vmem:[#allocation4 + $0x148] ss:$16 sps:$4 sm:$0xff]  }
 0x117   :  { %1631 = vmatpush1.bf16.msra.mxu1 %v3113_v34  ;;  %v3338_v34 = vld [vmem:[#allocation7 + $0x50] ss:$8 sps:$4 sm:$0xff]  }
 0x118   :  { %1632 = vmatprep.subr.bf16.mxu1 %v3121_v35  ;;  %v3238_v35 = vld [vmem:[#allocation4 + $0x14c] ss:$16 sps:$4 sm:$0xff]  }
 0x119   :  { %1813 = vmatpush1.bf16.msra.mxu0 %v3269_v41  ;;  %v3346_v41 = vld [vmem:[#allocation7 + $0x74] ss:$8 sps:$4 sm:$0xff]  }
 0x11a   :  { %2343 = vmatprep.subr.bf16.mxu0 %v3325_v14  ;;  %v3361_v14 = vld [vmem:[#allocation7 + $0xc4] ss:$8 sps:$4 sm:$0xff]  }
 0x11b   :  { %1633 = vmatpush1.bf16.msra.mxu1 %v3119_v39  ;;  %v3341_v39 = vld [vmem:[#allocation7 + $0x60] ss:$8 sps:$4 sm:$0xff]  }
 0x11c   :  { %1634 = vmatprep.subr.bf16.mxu1 %v3127_v40  ;;  %1815 = vmatmul.mubr.bf16.vlgmr.msra.gmra.mrb[8].mxu0 %v118_v45  ;;  %v3244_v40 = vld [vmem:[#allocation4 + $0x16c] ss:$16 sps:$4 sm:$0xff]  }
 0x11d   :  { %2344 = vmatpush1.bf16.msra.mxu0 %v3323_v13  ;;  %v3284_v13 = vld [vmem:[#allocation4 + $0x488] ss:$16 sps:$4 sm:$0xff]  }
 0x11e   :  { %2345 = vmatprep.subr.bf16.mxu0 %v3328_v15  ;;  %v3287_v15 = vld [vmem:[#allocation4 + $0x4a8] ss:$16 sps:$4 sm:$0xff]  }
 0x11f   :  { %1635 = vmatpush1.bf16.msra.mxu1 %v3125_v43  ;;  %v3344_v43 = vld [vmem:[#allocation7 + $0x70] ss:$8 sps:$4 sm:$0xff]  }
 0x120   :  { %1636 = vmatprep.subr.bf16.mxu1 %v3133_v44  ;;  %v3250_v44 = vld [vmem:[#allocation4 + $0x18c] ss:$16 sps:$4 sm:$0xff]  }
 0x121   :  { %2346 = vmatpush1.bf16.msra.mxu0 %v3326_v16  ;;  %v3364_v16 = vld [vmem:[#allocation7 + $0xd4] ss:$8 sps:$4 sm:$0xff]  }
 0x122   :  { %2347 = vmatprep.subr.bf16.mxu0 %v3331_v18  ;;  %v3290_v18 = vld [vmem:[#allocation4 + $0x4c8] ss:$16 sps:$4 sm:$0xff]  }
 0x123   :  { %1637 = vmatpush1.bf16.msra.mxu1 %v3131_v46 }
 0x124   :  { %1638 = vmatprep.subr.bf16.mxu1 %v3139_v47 }
 0x125   :  { %2348 = vmatpush1.bf16.msra.mxu0 %v3329_v20  ;;  %v3367_v20 = vld [vmem:[#allocation7 + $0xe4] ss:$8 sps:$4 sm:$0xff]  }
 0x126   :  { %2349 = vmatprep.subr.bf16.mxu0 %v3334_v22  ;;  %v3293_v22 = vld [vmem:[#allocation4 + $0x4e8] ss:$16 sps:$4 sm:$0xff]  }
 0x127   :  { %1639 = vmatpush1.bf16.msra.mxu1 %v3137_v48  ;;  %v3248_v48 = vld [vmem:[#allocation4 + $0x188] ss:$16 sps:$4 sm:$0xff]  }
 0x128   :  { %1640 = vmatprep.subr.bf16.mxu1 %v3145_v49  ;;  %v3347_v49 = vld [vmem:[#allocation7 + $0x80] ss:$8 sps:$4 sm:$0xff]  }
 0x129   :  { %2350 = vmatpush1.bf16.msra.mxu0 %v3332_v24  ;;  %v3370_v24 = vld [vmem:[#allocation7 + $0xf4] ss:$8 sps:$4 sm:$0xff]  }
 0x12a   :  { %2351 = vmatprep.subr.bf16.mxu0 %v3337_v27  ;;  %v3296_v27 = vld [vmem:[#allocation4 + $0x508] ss:$16 sps:$4 sm:$0xff]  }
 0x12b   :  { %1641 = vmatpush1.bf16.msra.mxu1 %v3143_v50 }
 0x12c   :  { %1642 = vmatprep.subr.bf16.mxu1 %v3151_v51  ;;  %v3256_v51 = vld [vmem:[#allocation4 + $0x1ac] ss:$16 sps:$4 sm:$0xff]  }
 0x12d   :  { %2352 = vmatpush1.bf16.msra.mxu0 %v3335_v29  ;;  %v3299_v29 = vld [vmem:[#allocation4 + $0x528] ss:$16 sps:$4 sm:$0xff]  }
 0x12e   :  { %2353 = vmatprep.subr.bf16.mxu0 %v3340_v31  ;;  %v3302_v31 = vld [vmem:[#allocation4 + $0x548] ss:$16 sps:$4 sm:$0xff]  }
 0x12f   :  { %1643 = vmatpush1.bf16.msra.mxu1 %v3149_v52  ;;  %v3352_v52 = vld [vmem:[#allocation7 + $0x94] ss:$8 sps:$4 sm:$0xff]  }
 0x130   :  { %1644 = vmatprep.subr.bf16.mxu1 %v3157_v53 }
 0x131   :  { %2354 = vmatpush1.bf16.msra.mxu0 %v3338_v34  ;;  %v3305_v34 = vld [vmem:[#allocation4 + $0x568] ss:$16 sps:$4 sm:$0xff]  }
 0x132   :  { %2355 = vmatprep.subr.bf16.mxu0 %v3343_v37 }
 0x133   :  { %1645 = vmatpush1.bf16.msra.mxu1 %v3155_v54  ;;  %v3254_v54 = vld [vmem:[#allocation4 + $0x1a8] ss:$16 sps:$4 sm:$0xff]  }
 0x134   :  { %1646 = vmatprep.subr.bf16.mxu1 %v3163_v56  ;;  %v3350_v56 = vld [vmem:[#allocation7 + $0x90] ss:$8 sps:$4 sm:$0xff]  }
 0x135   :  { %2356 = vmatpush1.bf16.msra.mxu0 %v3341_v39 }
 0x136   :  { %2357 = vmatprep.subr.bf16.mxu0 %v3346_v41 }
 0x137   :  { %1647 = vmatpush1.bf16.msra.mxu1 %v3161_v57  ;;  %v3262_v57 = vld [vmem:[#allocation4 + $0x1cc] ss:$16 sps:$4 sm:$0xff]  }
 0x138   :  { %1648 = vmatprep.subr.bf16.mxu1 %v3169_v58  ;;  %v3355_v58 = vld [vmem:[#allocation7 + $0xa4] ss:$8 sps:$4 sm:$0xff]  }
 0x139   :  { %2358 = vmatpush1.bf16.msra.mxu0 %v3344_v43 }
 0x13b   :  { %1649 = vmatpush1.bf16.msra.mxu1 %v3167_v59  ;;  %v3260_v59 = vld [vmem:[#allocation4 + $0x1c8] ss:$16 sps:$4 sm:$0xff]  }
 0x13c   :  { %1700 = vmatprep.subr.bf16.mxu1 %v3175_v60  ;;  %v3353_v60 = vld [vmem:[#allocation7 + $0xa0] ss:$8 sps:$4 sm:$0xff]  }
 0x13e   :  { %1651 = vmatmul.mubr.bf16.vlgmr.msra.gmra.mrb[8].mxu1 %v118_v45  ;;  %v3349_v45 = vld [vmem:[#allocation7 + $0x84] ss:$8 sps:$4 sm:$0xff]  }
 0x13f   :  { %1701 = vmatpush1.bf16.msra.mxu1 %v3173_v61  ;;  %1732 = vmatprep.mubr.bf16.mxu1 %v3566_v0  ;;  %v3268_v61 = vld [vmem:[#allocation4 + $0x1ec] ss:$16 sps:$4 sm:$0xff]  }
 0x140   :  { %1741 = vmatprep.subr.bf16.mxu1 %v3178_v62  ;;  %2359 = vmatprep.subr.bf16.mxu0 %v3349_v45  ;;  %v3266_v62 = vld [vmem:[#allocation4 + $0x1e8] ss:$16 sps:$4 sm:$0xff]  }
 0x141   :  { %2360 = vmatpush1.bf16.msra.mxu0 %v3347_v49  ;;  %v3313_v49 = vld [vmem:[#allocation4 + $0x5ac] ss:$16 sps:$4 sm:$0xff]  }
 0x142   :  { %2361 = vmatprep.subr.bf16.mxu0 %v3352_v52  ;;  %v3316_v52 = vld [vmem:[#allocation4 + $0x5cc] ss:$16 sps:$4 sm:$0xff]  }
 0x145   :  { %2362 = vmatpush1.bf16.msra.mxu0 %v3350_v56  ;;  %v3322_v56 = vld [vmem:[#allocation4 + $0x60c] ss:$16 sps:$4 sm:$0xff]  }
 0x146   :  { %2855 = vmatmul.mubr.msk.bf16.vlgmr.msra.gmra.mrb[12].mxu1 %vm1573_vm2, %v3725_v1  ;;  %2363 = vmatprep.subr.bf16.mxu0 %v3355_v58 }
 0x147   :  { %1742 = vmatpush1.bf16.msra.mxu1 %v3176_v2  ;;  %1773 = vmatprep.mubr.bf16.mxu1 %v3696_v36  ;;  %v3206_v36 = vld [vmem:[#allocation4 + $0xa8] ss:$16 sps:$4 sm:$0xff]  }
 0x148   :  { %1743 = vmatprep.subr.bf16.mxu1 %v3184_v3  ;;  %v3272_v2 = vld [vmem:[#allocation4 + $0x408] ss:$16 sps:$4 sm:$0xff]   ;;  %v3277_v3 = vld [vmem:[#allocation4 + $0x42c] ss:$16 sps:$4 sm:$0xff]  }
 0x149   :  { %2364 = vmatpush1.bf16.msra.mxu0 %v3353_v60 }
 0x14b   :  { %1744 = vmatpush1.bf16.msra.mxu1 %v3182_v4  ;;  %v3275_v4 = vld [vmem:[#allocation4 + $0x428] ss:$16 sps:$4 sm:$0xff]  }
 0x14c   :  { %1745 = vmatprep.subr.bf16.mxu1 %v3190_v5  ;;  %v3280_v5 = vld [vmem:[#allocation4 + $0x44c] ss:$16 sps:$4 sm:$0xff]  }
 0x14f   :  { %1746 = vmatpush1.bf16.msra.mxu1 %v3188_v6  ;;  %v3278_v6 = vld [vmem:[#allocation4 + $0x448] ss:$16 sps:$4 sm:$0xff]  }
 0x150   :  { %1747 = vmatprep.subr.bf16.mxu1 %v3196_v7  ;;  %v3283_v7 = vld [vmem:[#allocation4 + $0x46c] ss:$16 sps:$4 sm:$0xff]  }
 0x153   :  { %1748 = vmatpush1.bf16.msra.mxu1 %v3194_v8  ;;  %v3281_v8 = vld [vmem:[#allocation4 + $0x468] ss:$16 sps:$4 sm:$0xff]  }
 0x154   :  { %1749 = vmatprep.subr.bf16.mxu1 %v3202_v9  ;;  %v3286_v9 = vld [vmem:[#allocation4 + $0x48c] ss:$16 sps:$4 sm:$0xff]  }
 0x157   :  { %1750 = vmatpush1.bf16.msra.mxu1 %v3200_v10  ;;  %v3358_v10 = vld [vmem:[#allocation7 + $0xb4] ss:$8 sps:$4 sm:$0xff]  }
 0x158   :  { %1751 = vmatprep.subr.bf16.mxu1 %v3208_v11  ;;  %v3356_v11 = vld [vmem:[#allocation7 + $0xb0] ss:$8 sps:$4 sm:$0xff]   ;;  %2365 = vmatprep.subr.bf16.mxu0 %v3358_v10 }
 0x159   :  { %2366 = vmatpush1.bf16.msra.mxu0 %v3356_v11  ;;  %v3757_v11 = vld [vmem:[%s3791_s4] sm:$0xf] }
 0x15a   :  { %2367 = vmatprep.subr.bf16.mxu0 %v3361_v14 }
 0x15b   :  { %1752 = vmatpush1.bf16.msra.mxu1 %v3206_v36  ;;  %v3292_v36 = vld [vmem:[#allocation4 + $0x4cc] ss:$16 sps:$4 sm:$0xff]  }
 0x15c   :  { %1753 = vmatprep.subr.bf16.mxu1 %v3214_v17  ;;  %v3362_v17 = vld [vmem:[#allocation7 + $0xd0] ss:$8 sps:$4 sm:$0xff]  }
 0x15f   :  { %1754 = vmatpush1.bf16.msra.mxu1 %v3212_v19  ;;  %v3295_v19 = vld [vmem:[#allocation4 + $0x4ec] ss:$16 sps:$4 sm:$0xff]  }
 0x160   :  { %1755 = vmatprep.subr.bf16.mxu1 %v3220_v21  ;;  %v3365_v21 = vld [vmem:[#allocation7 + $0xe0] ss:$8 sps:$4 sm:$0xff]  }
 0x163   :  { %1756 = vmatpush1.bf16.msra.mxu1 %v3218_v23  ;;  %v3298_v23 = vld [vmem:[#allocation4 + $0x50c] ss:$16 sps:$4 sm:$0xff]  }
 0x164   :  { %1757 = vmatprep.subr.bf16.mxu1 %v3226_v26  ;;  %v3368_v26 = vld [vmem:[#allocation7 + $0xf0] ss:$8 sps:$4 sm:$0xff]  }
 0x167   :  { %1758 = vmatpush1.bf16.msra.mxu1 %v3224_v28  ;;  %v3301_v28 = vld [vmem:[#allocation4 + $0x52c] ss:$16 sps:$4 sm:$0xff]  }
 0x168   :  { %1759 = vmatprep.subr.bf16.mxu1 %v3232_v30  ;;  %v3304_v30 = vld [vmem:[#allocation4 + $0x54c] ss:$16 sps:$4 sm:$0xff]  }
 0x16b   :  { %1760 = vmatpush1.bf16.msra.mxu1 %v3230_v33  ;;  %v3307_v33 = vld [vmem:[#allocation4 + $0x56c] ss:$16 sps:$4 sm:$0xff]  }
 0x16c   :  { %1761 = vmatprep.subr.bf16.mxu1 %v3238_v35  ;;  %v3310_v35 = vld [vmem:[#allocation4 + $0x58c] ss:$16 sps:$4 sm:$0xff]  }
 0x16f   :  { %1762 = vmatpush1.bf16.msra.mxu1 %v3236_v38  ;;  %v3730_v46 = vpop.f32.mrb[0].mxu0 }
 0x170   :  { %1763 = vmatprep.subr.bf16.mxu1 %v3244_v40  ;;  %v3732_v47 = vpop.f32.mrb[1].mxu0 }
 0x171   :  { %v1615_v50 = vpop.f32.mrb[2].mxu0 }
 0x172   :  { %v1616_v53 = vpop.f32.mrb[3].mxu0 }
 0x173   :  { %1764 = vmatpush1.bf16.msra.mxu1 %v3242_v42  ;;  %v3314_v53 = vld [vmem:[#allocation4 + $0x5c8] ss:$16 sps:$4 sm:$0xff]  }
 0x174   :  { %1765 = vmatprep.subr.bf16.mxu1 %v3250_v44  ;;  %v3308_v44 = vld [vmem:[#allocation4 + $0x588] ss:$16 sps:$4 sm:$0xff]  }
 0x177   :  { %1766 = vmatpush1.bf16.msra.mxu1 %v3248_v48 }
 0x178   :  { %1767 = vmatprep.subr.bf16.mxu1 %v3256_v51  ;;  %v3311_v51 = vld [vmem:[#allocation4 + $0x5a8] ss:$16 sps:$4 sm:$0xff]  }
 0x17b   :  { %1768 = vmatpush1.bf16.msra.mxu1 %v3254_v54  ;;  %v3317_v54 = vld [vmem:[#allocation4 + $0x5e8] ss:$16 sps:$4 sm:$0xff]  }
 0x17c   :  { %1769 = vmatprep.subr.bf16.mxu1 %v3262_v57 }
 0x17f   :  { %1770 = vmatpush1.bf16.msra.mxu1 %v3260_v59 }
 0x180   :  { %1771 = vmatprep.subr.bf16.mxu1 %v3268_v61  ;;  %v3373_v61 = vld [vmem:[#allocation7 + $0x104] ss:$8 sps:$4 sm:$0xff]  }
 0x183   :  { %1772 = vmatpush1.bf16.msra.mxu1 %v3266_v62 }
 0x184   :  { %1823 = vmatprep.subr.bf16.mxu1 %v3274_v63 }
 0x186   :  { %1774 = vmatmul.mubr.bf16.vlgmr.msra.gmra.mrb[16].mxu1 %v3699_v55  ;;  %v3289_v55 = vld [vmem:[#allocation4 + $0x4ac] ss:$16 sps:$4 sm:$0xff]  }
 0x187   :  { %1824 = vmatpush1.bf16.msra.mxu1 %v3272_v2  ;;  %1855 = vmatprep.mubr.bf16.mxu1 %v3702_v12  ;;  %v3359_v12 = vld [vmem:[#allocation7 + $0xc0] ss:$8 sps:$4 sm:$0xff]  }
 0x188   :  { %1825 = vmatprep.subr.bf16.mxu1 %v3277_v3  ;;  %2368 = vmatpush1.bf16.msra.mxu0 %v3359_v12  ;;  %v3751_v3 = vshrl.u32 %v100_v25, 7 }
 0x189   :  { %2369 = vmatprep.subr.bf16.mxu0 %v3364_v16 }
 0x18b   :  { %1826 = vmatpush1.bf16.msra.mxu1 %v3275_v4 }
 0x18c   :  { %1827 = vmatprep.subr.bf16.mxu1 %v3280_v5  ;;  %2370 = vmatpush1.bf16.msra.mxu0 %v3362_v17 }
 0x18d   :  { %2371 = vmatprep.subr.bf16.mxu0 %v3367_v20 }
 0x18f   :  { %1828 = vmatpush1.bf16.msra.mxu1 %v3278_v6 }
 0x190   :  { %1829 = vmatprep.subr.bf16.mxu1 %v3283_v7  ;;  %2372 = vmatpush1.bf16.msra.mxu0 %v3365_v21 }
 0x191   :  { %2373 = vmatprep.subr.bf16.mxu0 %v3370_v24 }
 0x193   :  { %1830 = vmatpush1.bf16.msra.mxu1 %v3281_v8 }
 0x194   :  { %1831 = vmatprep.subr.bf16.mxu1 %v3286_v9  ;;  %2374 = vmatpush1.bf16.msra.mxu0 %v3368_v26  ;;  %v1909_v9 = vsub.s32 0, %v3751_v3  ;;  %v3371_v26 = vld [vmem:[#allocation7 + $0x100] ss:$8 sps:$4 sm:$0xff]  }
 0x195   :  { %2384 = vmatprep.subr.bf16.mxu0 %v3373_v61  ;;  %v3400_v61 = vld [vmem:[#allocation7 + $0x194] ss:$8 sps:$4 sm:$0xff]  }
 0x196   :  { %v1910_v25 = vrot.slane %v3757_v11, %v1909_v9 }
 0x197   :  { %1832 = vmatpush1.bf16.msra.mxu1 %v3284_v13  ;;  %v1913_v13 = vsub.s32 1, %v3751_v3 }
 0x198   :  { %1833 = vmatprep.subr.bf16.mxu1 %v3289_v55 }
 0x199   :  { %v1914_v14 = vrot.slane %v3757_v11, %v1913_v13 }
 0x19b   :  { %1834 = vmatpush1.bf16.msra.mxu1 %v3287_v15 }
 0x19c   :  { %1835 = vmatprep.subr.bf16.mxu1 %v3292_v36 }
 0x19f   :  { %1836 = vmatpush1.bf16.msra.mxu1 %v3290_v18 }
 0x1a0   :  { %1837 = vmatprep.subr.bf16.mxu1 %v3295_v19 }
 0x1a3   :  { %1838 = vmatpush1.bf16.msra.mxu1 %v3293_v22 }
 0x1a4   :  { %1839 = vmatprep.subr.bf16.mxu1 %v3298_v23 }
 0x1a7   :  { %1840 = vmatpush1.bf16.msra.mxu1 %v3296_v27 }
 0x1a8   :  { %1841 = vmatprep.subr.bf16.mxu1 %v3301_v28  ;;  %v3376_v28 = vld [vmem:[#allocation7 + $0x114] ss:$8 sps:$4 sm:$0xff]  }
 0x1ab   :  { %1842 = vmatpush1.bf16.msra.mxu1 %v3299_v29  ;;  %v3374_v29 = vld [vmem:[#allocation7 + $0x110] ss:$8 sps:$4 sm:$0xff]  }
 0x1ac   :  { %1843 = vmatprep.subr.bf16.mxu1 %v3304_v30  ;;  %v3379_v30 = vld [vmem:[#allocation7 + $0x124] ss:$8 sps:$4 sm:$0xff]  }
 0x1af   :  { %1844 = vmatpush1.bf16.msra.mxu1 %v3302_v31  ;;  %v1693_v38 = vpop.f32.mrb[4].mxu0  ;;  %v3377_v31 = vld [vmem:[#allocation7 + $0x120] ss:$8 sps:$4 sm:$0xff]  }
 0x1b0   :  { %1845 = vmatprep.subr.bf16.mxu1 %v3307_v33  ;;  %v1695_v41 = vpop.f32.mrb[5].mxu0  ;;  %v3382_v33 = vld [vmem:[#allocation7 + $0x134] ss:$8 sps:$4 sm:$0xff]  }
 0x1b1   :  { %v545_v37 = vpop.f32.mrb[0].mxu1  ;;  %v1697_v45 = vpop.f32.mrb[6].mxu0 }
 0x1b2   :  { %v1612_v39 = vadd.f32 %v3730_v46, %v545_v37  ;;  %v547_v40 = vpop.f32.mrb[1].mxu1  ;;  %v1698_v50 = vpop.f32.mrb[7].mxu0  ;;  %v3319_v46 = vld [vmem:[#allocation4 + $0x5ec] ss:$16 sps:$4 sm:$0xff]  }
 0x1b3   :  { %1846 = vmatpush1.bf16.msra.mxu1 %v3305_v34  ;;  %v1614_v42 = vadd.f32 %v3732_v47, %v547_v40  ;;  %v549_v43 = vpop.f32.mrb[2].mxu1  ;;  %v3320_v47 = vld [vmem:[#allocation4 + $0x608] ss:$16 sps:$4 sm:$0xff]   ;;  %v3419_v34 = vld [vmem:[#allocation9 + $0x40] sm:$0xff]  }
 0x1b4   :  { %v550_v48 = vpop.f32.mrb[3].mxu1  ;;  %1847 = vmatprep.subr.bf16.mxu1 %v3310_v35  ;;  %v3420_v35 = vld [vmem:[#allocation9] sm:$0xff]   ;;  %v3421_v37 = vld [vmem:[#allocation9 + $0x48] sm:$0xff]   ;;  %v3388_v43 = vld [vmem:[#allocation7 + $0x154] ss:$8 sps:$4 sm:$0xff]  }
 0x1b5   :  { %v3422_v40 = vld [vmem:[#allocation9 + $0x8] sm:$0xff]   ;;  %v3425_v45 = vld [vmem:[#allocation9 + $0x58] sm:$0xff]  }
 0x1b6   :  { %v3386_v48 = vld [vmem:[#allocation7 + $0x150] ss:$8 sps:$4 sm:$0xff]  }
 0x1b7   :  { %1848 = vmatpush1.bf16.msra.mxu1 %v3308_v44  ;;  %v3424_v44 = vld [vmem:[#allocation9 + $0x10] sm:$0xff]   ;;  %v3426_v50 = vld [vmem:[#allocation9 + $0x18] sm:$0xff]  }
 0x1b8   :  { %1849 = vmatprep.subr.bf16.mxu1 %v3313_v49  ;;  %v3391_v49 = vld [vmem:[#allocation7 + $0x164] ss:$8 sps:$4 sm:$0xff]  }
 0x1bb   :  { %1850 = vmatpush1.bf16.msra.mxu1 %v3311_v51  ;;  %v3427_v51 = vld [vmem:[#allocation9 + $0x60] sm:$0xff]  }
 0x1bc   :  { %1851 = vmatprep.subr.bf16.mxu1 %v3316_v52  ;;  %v3389_v52 = vld [vmem:[#allocation7 + $0x160] ss:$8 sps:$4 sm:$0xff]  }
 0x1bf   :  { %1852 = vmatpush1.bf16.msra.mxu1 %v3314_v53  ;;  %v3394_v53 = vld [vmem:[#allocation7 + $0x174] ss:$8 sps:$4 sm:$0xff]  }
 0x1c0   :  { %1853 = vmatprep.subr.bf16.mxu1 %v3319_v46  ;;  %v3428_v46 = vld [vmem:[#allocation9 + $0x20] sm:$0xff]  }
 0x1c3   :  { %1854 = vmatpush1.bf16.msra.mxu1 %v3317_v54  ;;  %v3429_v54 = vld [vmem:[#allocation9 + $0x68] sm:$0xff]  }
 0x1c4   :  { %1864 = vmatprep.subr.bf16.mxu1 %v3322_v56  ;;  %v3392_v56 = vld [vmem:[#allocation7 + $0x170] ss:$8 sps:$4 sm:$0xff]  }
 0x1c6   :  { %1856 = vmatmul.mubr.bf16.vlgmr.msra.gmra.mrb[20].mxu1 %v3706_v32 }
 0x1c7   :  { %1865 = vmatpush1.bf16.msra.mxu1 %v3320_v47  ;;  %1896 = vmatprep.mubr.bf16.mxu1 %v3566_v0  ;;  %v3397_v47 = vld [vmem:[#allocation7 + $0x184] ss:$8 sps:$4 sm:$0xff]  }
 0x1c8   :  { %2939 = vmatprep.subr.bf16.mxu1 %v3419_v34 }
 0x1ce   :  { %2856 = vmatmul.mubr.msk.bf16.vlgmr.msra.gmra.mrb[24].mxu1 %vm1573_vm2, %v3725_v1 }
 0x1cf   :  { %2940 = vmatpush3.bf16.msra.mxu1 %v3420_v35 }
 0x1d0   :  { %2941 = vmatprep.subr.bf16.mxu1 %v3421_v37 }
 0x1d1   :  { %v3742_v57 = vpop.f32.mrb[4].mxu1 }
 0x1d2   :  { %v3744_v58 = vpop.f32.mrb[5].mxu1 }
 0x1d3   :  { %v590_v59 = vpop.f32.mrb[6].mxu1  ;;  %2942 = vmatpush3.bf16.msra.mxu1 %v3422_v40 }
 0x1d4   :  { %v591_v60 = vpop.f32.mrb[7].mxu1  ;;  %v3430_v59 = vld [vmem:[#allocation9 + $0x28] sm:$0xff]  }
 0x1d5   :  { %v3395_v60 = vld [vmem:[#allocation7 + $0x180] ss:$8 sps:$4 sm:$0xff]  }
 0x1ef   :  { %v3746_v62 = vpop.f32.mrb[8].mxu0 }
 0x1f0   :  { %v3748_v63 = vpop.f32.mrb[9].mxu0 }
 0x1f1   :  { %v1820_v2 = vpop.f32.mrb[10].mxu0 }
 0x1f2   :  { %v1821_v32 = vpop.f32.mrb[11].mxu0  ;;  %v3398_v2 = vld [vmem:[#allocation7 + $0x190] ss:$8 sps:$4 sm:$0xff]  }
 0x1f3   :  { %v3403_v32 = vld [vmem:[#allocation7 + $0x1a4] ss:$8 sps:$4 sm:$0xff]  }
 0x211   :  { %v1652_v0 = vpop.f32.mrb[8].mxu1 }
 0x212   :  { %v1653_v4 = vadd.f32 %v1652_v0, %v1612_v39  ;;  %v1654_v1 = vpop.f32.mrb[9].mxu1  ;;  %v3385_v39 = vld [vmem:[#allocation7 + $0x144] ss:$8 sps:$4 sm:$0xff]   ;;  %v3401_v0 = vld [vmem:[#allocation7 + $0x1a0] ss:$8 sps:$4 sm:$0xff]  }
 0x213   :  { %v1655_v5 = vadd.f32 %v1654_v1, %v1614_v42  ;;  %v1656_v6 = vpop.f32.mrb[10].mxu1  ;;  %v3383_v42 = vld [vmem:[#allocation7 + $0x140] ss:$8 sps:$4 sm:$0xff]   ;;  %v3404_v1 = vld [vmem:[#allocation7 + $0x1b0] ss:$8 sps:$4 sm:$0xff]  }
 0x214   :  { %v1694_v7 = vadd.f32 %v1693_v38, %v1653_v4  ;;  %v1657_v8 = vpop.f32.mrb[11].mxu1  ;;  %v3380_v38 = vld [vmem:[#allocation7 + $0x130] ss:$8 sps:$4 sm:$0xff]   ;;  %v3406_v4 = vld [vmem:[#allocation7 + $0x1b4] ss:$8 sps:$4 sm:$0xff]  }
 0x215   :  { %v1696_v10 = vadd.f32 %v1695_v41, %v1655_v5  ;;  %v3423_v41 = vld [vmem:[#allocation9 + $0x50] sm:$0xff]   ;;  %v3409_v5 = vld [vmem:[#allocation7 + $0x1c4] ss:$8 sps:$4 sm:$0xff]   ;;  %v3407_v6 = vld [vmem:[#allocation7 + $0x1c0] ss:$8 sps:$4 sm:$0xff]  }
 0x216   :  { %2943 = vmatprep.subr.bf16.mxu1 %v3423_v41  ;;  %v3410_v8 = vld [vmem:[#allocation7 + $0x1d0] ss:$8 sps:$4 sm:$0xff]  }
 0x217   :  { %2944 = vmatpush3.bf16.msra.mxu1 %v3424_v44  ;;  %v3431_v44 = vld [vmem:[#allocation9 + $0x70] sm:$0xff]  }
 0x218   :  { %2945 = vmatprep.subr.bf16.mxu1 %v3425_v45  ;;  %v3432_v45 = vld [vmem:[#allocation9 + $0x30] sm:$0xff]  }
 0x219   :  { %v1734_v55 = vpop.f32.mrb[12].mxu1 }
 0x21a   :  { %v1735_v12 = vadd.f32 %v1734_v55, %v1694_v7  ;;  %v1736_v15 = vpop.f32.mrb[13].mxu1  ;;  %v3412_v7 = vld [vmem:[#allocation7 + $0x1d4] ss:$8 sps:$4 sm:$0xff]  }
 0x21b   :  { %v1737_v36 = vadd.f32 %v1736_v15, %v1696_v10  ;;  %v1738_v16 = vpop.f32.mrb[14].mxu1  ;;  %2946 = vmatpush3.bf16.msra.mxu1 %v3426_v50  ;;  %v3415_v10 = vld [vmem:[#allocation7 + $0x1e4] ss:$8 sps:$4 sm:$0xff]  }
 0x21c   :  { %v1927_v17 = vadd.f32 %v1910_v25, %v1735_v12  ;;  %v1739_v18 = vpop.f32.mrb[15].mxu1  ;;  %2947 = vmatprep.subr.bf16.mxu1 %v3427_v51  ;;  %v3413_v12 = vld [vmem:[#allocation7 + $0x1e0] ss:$8 sps:$4 sm:$0xff]   ;;  %v3418_v16 = vld [vmem:[#allocation7 + $0x1f4] ss:$8 sps:$4 sm:$0xff]  }
 0x21d   :  { %v1928_v19 = vadd.f32 %v1914_v14, %v1737_v36 }
 0x21e   :  { %vm1931_vm3 = vcmp.gt.f32.partialorder %v1927_v17, 0.0  ;;  %v1935_v20 = vmul.f32 0.2, %v1927_v17 }
 0x21f   :  { %v1936_v21 = vmul.f32 0.2, %v1928_v19  ;;  %vm1932_vm4 = vcmp.gt.f32.partialorder %v1928_v19, 0.0  ;;  %2948 = vmatpush3.bf16.msra.mxu1 %v3428_v46 }
 0x220   :  { %v1939_v22 = vsel %vm1931_vm3, %v1927_v17, %v1935_v20  ;;  %2949 = vmatprep.subr.bf16.mxu1 %v3429_v54  ;;  %v3416_v20 = vld [vmem:[#allocation7 + $0x1f0] ss:$8 sps:$4 sm:$0xff]  }
 0x221   :  { %v1940_v23 = vsel %vm1932_vm4, %v1928_v19, %v1936_v21  ;;  %v1943_v27 = vpack.c.bf16 %v1939_v22, %v1939_v22 }
 0x222   :  { %v1944_v24 = vpack.c.bf16 %v1940_v23, %v1940_v23 }
 0x223   :  { %2950 = vmatpush3.bf16.msra.mxu1 %v3430_v59 }
 0x224   :  { %2375 = vmatprep.mubr.bf16.mxu0 %v1944_v24  ;;  %2951 = vmatprep.subr.bf16.mxu1 %v3431_v44 }
 0x225   :  { %2376 = vmatmul.mubr.bf16.vlgmr.msra.gmra.mrb[12].mxu0 %v1943_v27  ;;  %v1921_v27 = vsub.s32 3, %v3751_v3 }
 0x226   :  { %2385 = vmatpush1.bf16.msra.mxu0 %v3371_v26 }
 0x227   :  { %2386 = vmatprep.subr.bf16.mxu0 %v3376_v28  ;;  %2952 = vmatpush3.bf16.msra.mxu1 %v3432_v45 }
 0x22a   :  { %2387 = vmatpush1.bf16.msra.mxu0 %v3374_v29  ;;  %v1922_v29 = vrot.slane %v3757_v11, %v1921_v27 }
 0x22b   :  { %2388 = vmatprep.subr.bf16.mxu0 %v3379_v30 }
 0x22e   :  { %2389 = vmatpush1.bf16.msra.mxu0 %v3377_v31 }
 0x22f   :  { %2390 = vmatprep.subr.bf16.mxu0 %v3382_v33 }
 0x232   :  { %2391 = vmatpush1.bf16.msra.mxu0 %v3380_v38 }
 0x233   :  { %2392 = vmatprep.subr.bf16.mxu0 %v3385_v39 }
 0x236   :  { %2393 = vmatpush1.bf16.msra.mxu0 %v3383_v42 }
 0x237   :  { %2394 = vmatprep.subr.bf16.mxu0 %v3388_v43 }
 0x23a   :  { %2395 = vmatpush1.bf16.msra.mxu0 %v3386_v48  ;;  %v3434_v48 = vld [vmem:[#allocation9 + $0x38] sm:$0xff]  }
 0x23b   :  { %2396 = vmatprep.subr.bf16.mxu0 %v3391_v49  ;;  %v2011_v49 = vld [vmem:[%s3793_s6] sm:$0x3] }
 0x23c   :  { %v2016_v50 = vrot.slane %v2011_v49, %v1909_v9  ;;  %v2020_v51 = vrot.slane %v2011_v49, %v1913_v13 }
 0x23e   :  { %2397 = vmatpush1.bf16.msra.mxu0 %v3389_v52 }
 0x23f   :  { %2398 = vmatprep.subr.bf16.mxu0 %v3394_v53 }
 0x242   :  { %2399 = vmatpush1.bf16.msra.mxu0 %v3392_v56 }
 0x243   :  { %2400 = vmatprep.subr.bf16.mxu0 %v3397_v47 }
 0x246   :  { %2401 = vmatpush1.bf16.msra.mxu0 %v3395_v60 }
 0x247   :  { %2402 = vmatprep.subr.bf16.mxu0 %v3400_v61 }
 0x24a   :  { %2403 = vmatpush1.bf16.msra.mxu0 %v3398_v2 }
 0x24b   :  { %2404 = vmatprep.subr.bf16.mxu0 %v3403_v32 }
 0x24e   :  { %2405 = vmatpush1.bf16.msra.mxu0 %v3401_v0 }
 0x24f   :  { %2406 = vmatprep.subr.bf16.mxu0 %v3406_v4 }
 0x252   :  { %2407 = vmatpush1.bf16.msra.mxu0 %v3404_v1 }
 0x253   :  { %2408 = vmatprep.subr.bf16.mxu0 %v3409_v5 }
 0x256   :  { %2409 = vmatpush1.bf16.msra.mxu0 %v3407_v6 }
 0x257   :  { %2410 = vmatprep.subr.bf16.mxu0 %v3412_v7 }
 0x259   :  { %v1775_v25 = vpop.f32.mrb[16].mxu1 }
 0x25a   :  { %v1776_v55 = vadd.f32 %v1775_v25, %v3742_v57  ;;  %v1777_v14 = vpop.f32.mrb[17].mxu1  ;;  %2411 = vmatpush1.bf16.msra.mxu0 %v3410_v8 }
 0x25b   :  { %v1778_v15 = vadd.f32 %v1777_v14, %v3744_v58  ;;  %v1779_v36 = vpop.f32.mrb[18].mxu1  ;;  %2412 = vmatprep.subr.bf16.mxu0 %v3415_v10  ;;  %v1917_v58 = vsub.s32 2, %v3751_v3  ;;  %v2921_v3 = vld [vmem:[%s3795_s8] ss:$0 sm:$0xff] }
 0x25c   :  { %v1817_v17 = vadd.f32 %v3746_v62, %v1776_v55  ;;  %v1780_v18 = vpop.f32.mrb[19].mxu1 }
 0x25d   :  { %v1819_v19 = vadd.f32 %v3748_v63, %v1778_v15  ;;  %v1918_v28 = vrot.slane %v3757_v11, %v1917_v58  ;;  %v3433_v11 = vld [vmem:[#allocation9 + $0x78] sm:$0xff]  }
 0x25e   :  { %2413 = vmatpush1.bf16.msra.mxu0 %v3413_v12  ;;  %2953 = vmatprep.subr.bf16.mxu1 %v3433_v11 }
 0x25f   :  { %2414 = vmatprep.subr.bf16.mxu0 %v3418_v16  ;;  %2954 = vmatpush3.bf16.msra.mxu1 %v3434_v48 }
 0x262   :  { %2415 = vmatpush1.bf16.msra.mxu0 %v3416_v20 }
 0x299   :  { %v1857_v21 = vpop.f32.mrb[20].mxu1 }
 0x29a   :  { %v1858_v22 = vadd.f32 %v1857_v21, %v1817_v17  ;;  %v1859_v57 = vpop.f32.mrb[21].mxu1 }
 0x29b   :  { %v1860_v23 = vadd.f32 %v1859_v57, %v1819_v19  ;;  %v1861_v24 = vpop.f32.mrb[22].mxu1 }
 0x29c   :  { %v1862_v26 = vpop.f32.mrb[23].mxu1 }
 0x2a1   :  { %v1898_v62 = vpop.f32.mrb[24].mxu1 }
 0x2a2   :  { %v1899_v63 = vadd.f32 %v1898_v62, %v1858_v22  ;;  %v1900_v30 = vpop.f32.mrb[25].mxu1 }
 0x2a3   :  { %v1901_v31 = vadd.f32 %v1900_v30, %v1860_v23  ;;  %v1902_v33 = vpop.f32.mrb[26].mxu1 }
 0x2a4   :  { %v1929_v34 = vadd.f32 %v1918_v28, %v1899_v63  ;;  %v1903_v35 = vpop.f32.mrb[27].mxu1 }
 0x2a5   :  { %v1930_v37 = vadd.f32 %v1922_v29, %v1901_v31 }
 0x2a6   :  { %vm1933_vm5 = vcmp.gt.f32.partialorder %v1929_v34, 0.0  ;;  %v1937_v38 = vmul.f32 0.2, %v1929_v34 }
 0x2a7   :  { %v1938_v39 = vmul.f32 0.2, %v1930_v37  ;;  %vm1934_vm6 = vcmp.gt.f32.partialorder %v1930_v37, 0.0 }
 0x2a8   :  { %v1941_v40 = vsel %vm1933_vm5, %v1929_v34, %v1937_v38 }
 0x2a9   :  { %v1942_v41 = vsel %vm1934_vm6, %v1930_v37, %v1938_v39  ;;  %v1945_v43 = vpack.c.bf16 %v1941_v40, %v1941_v40 }
 0x2aa   :  { %v1946_v42 = vpack.c.bf16 %v1942_v41, %v1942_v41 }
 0x2ac   :  { %2416 = vmatprep.mubr.bf16.mxu0 %v1946_v42 }
 0x2ad   :  { %2417 = vmatmul.mubr.bf16.vlgmr.msra.gmra.mrb[12].mxu0 %v1945_v43 }
 0x380   :  { %v2418_v52 = vpop.f32.mrb[12].mxu0 }
 0x381   :  { %v2961_v53 = vadd.f32 %v2418_v52, %v2016_v50  ;;  %v2420_v46 = vpop.f32.mrb[13].mxu0 }
 0x382   :  { %v2962_v54 = vadd.f32 %v2420_v46, %v2020_v51  ;;  %v2422_v56 = vpop.f32.mrb[14].mxu0 }
 0x383   :  { %vm2425_vm7 = vcmp.gt.f32.partialorder %v2961_v53, 0.0  ;;  %v2427_v47 = vmul.f32 0.2, %v2961_v53  ;;  %v2423_v59 = vpop.f32.mrb[15].mxu0 }
 0x384   :  { %vm2426_vm8 = vcmp.gt.f32.partialorder %v2962_v54, 0.0  ;;  %v2428_v60 = vmul.f32 0.2, %v2962_v54 }
 0x385   :  { %v2429_v61 = vsel %vm2425_vm7, %v2961_v53, %v2427_v47 }
 0x386   :  { %v2430_v2 = vsel %vm2426_vm8, %v2962_v54, %v2428_v60  ;;  %v2431_v0 = vpack.c.bf16 %v2429_v61, %v2429_v61 }
 0x387   :  { %v2432_v32 = vpack.c.bf16 %v2430_v2, %v2430_v2 }
 0x389   :  { %2600 = vmatprep.mubr.bf16.mxu1 %v2432_v32 }
 0x38a   :  { %2601 = vmatmul.mubr.bf16.vlgmr.msra.gmra.mrb[28].mxu1 %v2431_v0 }
 0x45d   :  { %v2955_v9 = vpop.f32.mrb[28].mxu1 }
 0x45e   :  { %v2956_v13 = vpop.f32.mrb[29].mxu1 }
 0x45f   :  { %v2957_v4 = vadd.f32 %v2956_v13, %v2955_v9  ;;  %v2958_v1 = vpop.f32.mrb[30].mxu1 }
 0x460   :  { %v2959_v5 = vpop.f32.mrb[31].mxu1 }
 0x461   :  { %v2603_v6 = vadd.f32 %v2957_v4, %v2921_v3 }
 0x463   :  { %v2938_v7 = vmul.f32 -1.442695, %v2603_v6 }
 0x465   :  { %3435 = vpow2.f32 %v2938_v7 }
 0x46f   :  { %v3436_v8 = vpop.eup %3435 }
 0x470   :  { %v2611_v10 = vadd.f32 1.0, %v3436_v8 }
 0x472   :  { %3437 = vrcp.f32 %v2611_v10 }
 0x47c   :  { %v3438_v25 = vpop.eup %3437 }
 0x47d   :  { %2614 = vst [vmem:[%s3796_s9] sm:$0xff] %v3438_v25 }
 0x47e   :  { %2619 = vsyncpa [#allocation3], 1 }
 0x47f   :  { %2620 = vsyncpa [#allocation5], 1 }
 0x480   :  { %2621 = vsyncpa [#allocation8], 1 }

</bundles_post_ra>
